<compile_context>
chip_gen: v7x
topology: tpu7x:2x2x1
jax: 0.10.0
libtpu: 0.0.40
codegen_flags: <defaults>
</compile_context>

<pallas_src>
import functools

import jax
import jax.numpy as jnp
from jax.experimental import pallas as pl
from jax.experimental.pallas import tpu as pltpu


# ----------------------------------------------------------------------------
# Fused Pallas kernel: conv1(+relu) -> conv2 -> linear
# ----------------------------------------------------------------------------
def _fused_sage_kernel(a_ref, x_ref, invdeg_ref,
                       wl1_ref, wr1_ref, b1_ref,
                       wl2_ref, wr2_ref, b2_ref,
                       wlin_ref, blin_ref,
                       h1_out, h2_out, y_out,
                       xw_scr, h1_scr, *, tm):
    s = pl.program_id(0)                       # stage: 0 = conv1, 1 = conv2+lin
    j = pl.program_id(1)                       # row tile index
    row = pl.multiple_of(j * tm, tm)

    # --- stage prologue: project ALL node features once per layer -----------
    # (reassociation: A @ (X @ W_l) == (A @ X) @ W_l, one big matmul per tile)
    @pl.when(jnp.logical_and(s == 0, j == 0))
    def _():
        xw_scr[...] = jnp.dot(x_ref[...], wl1_ref[...],
                              preferred_element_type=jnp.float32)

    @pl.when(jnp.logical_and(s == 1, j == 0))
    def _():
        xw_scr[...] = jnp.dot(h1_scr[...], wl2_ref[...],
                              preferred_element_type=jnp.float32)

    # mean neighbor aggregation for this row tile: (counts @ XW) * (1/deg)
    agg = jnp.dot(a_ref[...], xw_scr[...],
                  preferred_element_type=jnp.float32) * invdeg_ref[...]

    @pl.when(s == 0)
    def _():
        root = jnp.dot(x_ref[pl.ds(row, tm), :], wr1_ref[...],
                       preferred_element_type=jnp.float32)
        h1 = jnp.maximum(agg + root + b1_ref[...], 0.0)
        h1_scr[pl.ds(row, tm), :] = h1         # keep full h1 resident in VMEM
        h1_out[...] = h1
        # deterministic placeholders; real values written in stage 1
        h2_out[...] = jnp.zeros_like(h2_out)
        y_out[...] = jnp.zeros_like(y_out)

    @pl.when(s == 1)
    def _():
        h1_tile = h1_scr[pl.ds(row, tm), :]
        root = jnp.dot(h1_tile, wr2_ref[...],
                       preferred_element_type=jnp.float32)
        h2 = agg + root + b2_ref[...]
        y = jnp.dot(h2, wlin_ref[...],
                    preferred_element_type=jnp.float32) + blin_ref[...]
        h1_out[...] = h1_tile                  # revisited block: rewrite same values
        h2_out[...] = h2
        y_out[...] = y


# ----------------------------------------------------------------------------
# Wrapper
# ----------------------------------------------------------------------------
def sage_onehot_hetero_forward(x, edge_index, params, *, tm=128):
    """Forward pass of SAGE_OneHot_hetero. Returns (out_squeezed, embeddings)."""
    N = x.shape[0]
    x = x.reshape(N, -1).astype(jnp.float32)   # x.flatten(start_dim=1)
    F = x.shape[1]
    H = params["W_l1"].shape[1]
    assert N % tm == 0

    # Unnormalized neighbor-count matrix + exact 1/deg (O(N) work, no N^2 divide).
    src, dst = edge_index[0], edge_index[1]
    ones = jnp.ones(src.shape, jnp.float32)
    a_cnt = jnp.zeros((N, N), jnp.float32).at[dst, src].add(ones)
    deg = jnp.zeros((N,), jnp.float32).at[dst].add(ones)
    inv_deg = (1.0 / jnp.maximum(deg, 1.0)).reshape(N, 1)

    kernel = functools.partial(_fused_sage_kernel, tm=tm)
    nt = N // tm

    h1, h2, y = pl.pallas_call(
        kernel,
        out_shape=(jax.ShapeDtypeStruct((N, H), jnp.float32),
                   jax.ShapeDtypeStruct((N, H), jnp.float32),
                   jax.ShapeDtypeStruct((N, 1), jnp.float32)),
        grid_spec=pltpu.PrefetchScalarGridSpec(
            num_scalar_prefetch=0,
            grid=(2, nt),                                   # (stage, row tile)
            in_specs=[
                pl.BlockSpec((tm, N), lambda s, j: (j, 0)),   # count-matrix row tile
                pl.BlockSpec((N, F), lambda s, j: (0, 0)),    # full X (VMEM resident)
                pl.BlockSpec((tm, 1), lambda s, j: (j, 0)),   # 1/deg row tile
                pl.BlockSpec((F, H), lambda s, j: (0, 0)),    # W_l1
                pl.BlockSpec((F, H), lambda s, j: (0, 0)),    # W_r1
                pl.BlockSpec((1, H), lambda s, j: (0, 0)),    # b1
                pl.BlockSpec((H, H), lambda s, j: (0, 0)),    # W_l2
                pl.BlockSpec((H, H), lambda s, j: (0, 0)),    # W_r2
                pl.BlockSpec((1, H), lambda s, j: (0, 0)),    # b2
                pl.BlockSpec((H, 1), lambda s, j: (0, 0)),    # W_lin
                pl.BlockSpec((1, 1), lambda s, j: (0, 0)),    # b_lin
            ],
            out_specs=[
                pl.BlockSpec((tm, H), lambda s, j: (j, 0)),   # h1 (embedding 0)
                pl.BlockSpec((tm, H), lambda s, j: (j, 0)),   # h2 (embedding 1)
                pl.BlockSpec((tm, 1), lambda s, j: (j, 0)),   # y
            ],
            scratch_shapes=[
                pltpu.VMEM((N, H), jnp.float32),   # X@W_l (stage 0) / h1@W_l2 (stage 1)
                pltpu.VMEM((N, H), jnp.float32),   # full h1 (layer-2 input)
            ]),
        compiler_params=pltpu.CompilerParams(
            # stage 1 needs ALL of stage 0's h1 -> sequential grid on one core
            dimension_semantics=("arbitrary", "arbitrary")),
    )(a_cnt, x, inv_deg,
      params["W_l1"], params["W_r1"], params["b1"].reshape(1, H),
      params["W_l2"], params["W_r2"], params["b2"].reshape(1, H),
      params["W_lin"], params["b_lin"].reshape(1, 1))

    return jnp.squeeze(y, axis=-1), [h1, h2]


# ----------------------------------------------------------------------------
# Pure-JAX reference for validation (PyG SAGEConv semantics)
# ----------------------------------------------------------------------------
def reference_forward(x, edge_index, params):
    N = x.shape[0]
    x = x.reshape(N, -1).astype(jnp.float32)
    src, dst = edge_index[0], edge_index[1]
    ones = jnp.ones(src.shape, jnp.float32)
    A = jnp.zeros((N, N), jnp.float32).at[dst, src].add(ones)
    deg = jnp.maximum(A.sum(axis=1), 1.0)
    A = A / deg[:, None]
    h1 = jnp.maximum(
        (A @ x) @ params["W_l1"] + x @ params["W_r1"] + params["b1"], 0.0)
    h2 = (A @ h1) @ params["W_l2"] + h1 @ params["W_r2"] + params["b2"]
    y = h2 @ params["W_lin"] + params["b_lin"]
    return jnp.squeeze(y, axis=-1), [h1, h2]


# ----------------------------------------------------------------------------
# Main
# ----------------------------------------------------------------------------
if __name__ == "__main__":
    key = jax.random.PRNGKey(0)

    N = 256            # nodes
    C, K = 4, 4        # raw per-node feature shape -> flattened to 16
    F = C * K          # in_channels after flatten
    H = 32             # hidden_channels
    E = 512            # edges

    keys = jax.random.split(key, 10)
    x = jax.random.normal(keys[0], (N, C, K), jnp.float32)
    src = jax.random.randint(keys[1], (E,), 0, N, jnp.int32)
    dst = jax.random.randint(keys[2], (E,), 0, N, jnp.int32)
    edge_index = jnp.stack([src, dst], axis=0)

    def winit(k, shape):
        fan_in = shape[0]
        return jax.random.normal(k, shape, jnp.float32) / jnp.sqrt(
            jnp.float32(fan_in))

    params = {
        "W_l1": winit(keys[3], (F, H)),
        "W_r1": winit(keys[4], (F, H)),
        "b1": jnp.zeros((H,), jnp.float32),
        "W_l2": winit(keys[5], (H, H)),
        "W_r2": winit(keys[6], (H, H)),
        "b2": jnp.zeros((H,), jnp.float32),
        "W_lin": winit(keys[7], (H, 1)),
        "b_lin": jnp.zeros((1,), jnp.float32),
    }

    out, embs = sage_onehot_hetero_forward(x, edge_index, params)
    out = jax.block_until_ready(out)
    embs = [jax.block_until_ready(e) for e in embs]

    ref_out, ref_embs = reference_forward(x, edge_index, params)
    assert out.shape == (N,)
    assert embs[0].shape == (N, H) and embs[1].shape == (N, H)
    assert jnp.allclose(out, ref_out, atol=1e-4, rtol=1e-4)
    assert jnp.allclose(embs[0], ref_embs[0], atol=1e-4, rtol=1e-4)
    assert jnp.allclose(embs[1], ref_embs[1], atol=1e-4, rtol=1e-4)

    print("KERNEL_OK")
</pallas_src>

<mosaic_0001>
module attributes {stable_mosaic.version = 11 : i64} {
  func.func @_fused_sage_kernel(%arg0: i32, %arg1: i32, %arg2: memref<128x256xf32, #tpu.memory_space<vmem>>, %arg3: memref<256x16xf32, #tpu.memory_space<vmem>>, %arg4: memref<128x1xf32, #tpu.memory_space<vmem>>, %arg5: memref<16x32xf32, #tpu.memory_space<vmem>>, %arg6: memref<16x32xf32, #tpu.memory_space<vmem>>, %arg7: memref<1x32xf32, #tpu.memory_space<vmem>>, %arg8: memref<32x32xf32, #tpu.memory_space<vmem>>, %arg9: memref<32x32xf32, #tpu.memory_space<vmem>>, %arg10: memref<1x32xf32, #tpu.memory_space<vmem>>, %arg11: memref<32x1xf32, #tpu.memory_space<vmem>>, %arg12: memref<1x1xf32, #tpu.memory_space<vmem>>, %arg13: memref<128x32xf32, #tpu.memory_space<vmem>>, %arg14: memref<128x32xf32, #tpu.memory_space<vmem>>, %arg15: memref<128x1xf32, #tpu.memory_space<vmem>>, %arg16: memref<256x32xf32, #tpu.memory_space<vmem>>, %arg17: memref<256x32xf32, #tpu.memory_space<vmem>>) attributes {dimension_semantics = [#tpu.dimension_semantics<arbitrary>, #tpu.dimension_semantics<arbitrary>], iteration_bounds = array<i64: 2, 2>, scalar_prefetch = 0 : i64, scratch_operands = 2 : i64, tpu.core_type = #tpu.core_type<tc>, window_params = [{transform_indices = @transform_0, window_bounds = array<i64: 128, 256>}, {pipeline_mode = #tpu.pipeline_mode<synchronous>, transform_indices = @transform_1, window_bounds = array<i64: 256, 16>}, {transform_indices = @transform_2, window_bounds = array<i64: 128, 1>}, {pipeline_mode = #tpu.pipeline_mode<synchronous>, transform_indices = @transform_3, window_bounds = array<i64: 16, 32>}, {pipeline_mode = #tpu.pipeline_mode<synchronous>, transform_indices = @transform_4, window_bounds = array<i64: 16, 32>}, {pipeline_mode = #tpu.pipeline_mode<synchronous>, transform_indices = @transform_5, window_bounds = array<i64: 1, 32>}, {pipeline_mode = #tpu.pipeline_mode<synchronous>, transform_indices = @transform_6, window_bounds = array<i64: 32, 32>}, {pipeline_mode = #tpu.pipeline_mode<synchronous>, transform_indices = @transform_7, window_bounds = array<i64: 32, 32>}, {pipeline_mode = #tpu.pipeline_mode<synchronous>, transform_indices = @transform_8, window_bounds = array<i64: 1, 32>}, {pipeline_mode = #tpu.pipeline_mode<synchronous>, transform_indices = @transform_9, window_bounds = array<i64: 32, 1>}, {pipeline_mode = #tpu.pipeline_mode<synchronous>, transform_indices = @transform_10, window_bounds = array<i64: 1, 1>}, {transform_indices = @transform_11, window_bounds = array<i64: 128, 32>}, {transform_indices = @transform_12, window_bounds = array<i64: 128, 32>}, {transform_indices = @transform_13, window_bounds = array<i64: 128, 1>}]} {
    %c128_i32 = arith.constant 128 : i32
    %0 = arith.muli %arg1, %c128_i32 : i32
    %1 = tpu.assume_multiple %0, 128 : i32
    %c0_i32 = arith.constant 0 : i32
    %2 = arith.cmpi eq, %arg0, %c0_i32 : i32
    %c0_i32_0 = arith.constant 0 : i32
    %3 = arith.cmpi eq, %arg1, %c0_i32_0 : i32
    %4 = arith.andi %2, %3 : i1
    %5 = arith.extui %4 : i1 to i32
    %c0_i32_1 = arith.constant 0 : i32
    %6 = arith.cmpi ne, %5, %c0_i32_1 : i32
    scf.if %6 {
      %c0_13 = arith.constant 0 : index
      %c0_14 = arith.constant 0 : index
      %24 = vector.load %arg3[%c0_13, %c0_14] : memref<256x16xf32, #tpu.memory_space<vmem>>, vector<256x16xf32>
      %c0_15 = arith.constant 0 : index
      %c0_16 = arith.constant 0 : index
      %25 = vector.load %arg5[%c0_15, %c0_16] : memref<16x32xf32, #tpu.memory_space<vmem>>, vector<16x32xf32>
      %cst_17 = arith.constant dense<0.000000e+00> : vector<256x32xf32>
      %26 = tpu.matmul %24, %25, %cst_17 {dimension_numbers = #tpu.dot_dimension_numbers<[1], [0], [0], [1], [0, 0, 1, 1], [], []>} : vector<256x16xf32>, vector<16x32xf32>, vector<256x32xf32> -> vector<256x32xf32>
      %c0_18 = arith.constant 0 : index
      %c0_19 = arith.constant 0 : index
      %27 = vector.load %arg16[%c0_18, %c0_19] : memref<256x32xf32, #tpu.memory_space<vmem>>, vector<256x32xf32>
      tpu.vector_store %arg16[%c0_18, %c0_19], %26 {strides = array<i32>} : memref<256x32xf32, #tpu.memory_space<vmem>>, vector<256x32xf32>,
    } else {
    }
    %c1_i32 = arith.constant 1 : i32
    %7 = arith.cmpi eq, %arg0, %c1_i32 : i32
    %c0_i32_2 = arith.constant 0 : i32
    %8 = arith.cmpi eq, %arg1, %c0_i32_2 : i32
    %9 = arith.andi %7, %8 : i1
    %10 = arith.extui %9 : i1 to i32
    %c0_i32_3 = arith.constant 0 : i32
    %11 = arith.cmpi ne, %10, %c0_i32_3 : i32
    scf.if %11 {
      %c0_13 = arith.constant 0 : index
      %c0_14 = arith.constant 0 : index
      %24 = vector.load %arg17[%c0_13, %c0_14] : memref<256x32xf32, #tpu.memory_space<vmem>>, vector<256x32xf32>
      %c0_15 = arith.constant 0 : index
      %c0_16 = arith.constant 0 : index
      %25 = vector.load %arg8[%c0_15, %c0_16] : memref<32x32xf32, #tpu.memory_space<vmem>>, vector<32x32xf32>
      %cst_17 = arith.constant dense<0.000000e+00> : vector<256x32xf32>
      %26 = tpu.matmul %24, %25, %cst_17 {dimension_numbers = #tpu.dot_dimension_numbers<[1], [0], [0], [1], [0, 0, 1, 1], [], []>} : vector<256x32xf32>, vector<32x32xf32>, vector<256x32xf32> -> vector<256x32xf32>
      %c0_18 = arith.constant 0 : index
      %c0_19 = arith.constant 0 : index
      %27 = vector.load %arg16[%c0_18, %c0_19] : memref<256x32xf32, #tpu.memory_space<vmem>>, vector<256x32xf32>
      tpu.vector_store %arg16[%c0_18, %c0_19], %26 {strides = array<i32>} : memref<256x32xf32, #tpu.memory_space<vmem>>, vector<256x32xf32>,
    } else {
    }
    %c0 = arith.constant 0 : index
    %c0_4 = arith.constant 0 : index
    %12 = vector.load %arg2[%c0, %c0_4] : memref<128x256xf32, #tpu.memory_space<vmem>>, vector<128x256xf32>
    %c0_5 = arith.constant 0 : index
    %c0_6 = arith.constant 0 : index
    %13 = vector.load %arg16[%c0_5, %c0_6] : memref<256x32xf32, #tpu.memory_space<vmem>>, vector<256x32xf32>
    %cst = arith.constant dense<0.000000e+00> : vector<128x32xf32>
    %14 = tpu.matmul %12, %13, %cst {dimension_numbers = #tpu.dot_dimension_numbers<[1], [0], [0], [1], [0, 0, 1, 1], [], []>} : vector<128x256xf32>, vector<256x32xf32>, vector<128x32xf32> -> vector<128x32xf32>
    %c0_7 = arith.constant 0 : index
    %c0_8 = arith.constant 0 : index
    %15 = vector.load %arg4[%c0_7, %c0_8] : memref<128x1xf32, #tpu.memory_space<vmem>>, vector<128x1xf32>
    %16 = vector.broadcast %15 : vector<128x1xf32> to vector<128x32xf32>
    %17 = arith.mulf %14, %16 : vector<128x32xf32>
    %c0_i32_9 = arith.constant 0 : i32
    %18 = arith.cmpi eq, %arg0, %c0_i32_9 : i32
    %19 = arith.extui %18 : i1 to i32
    %c0_i32_10 = arith.constant 0 : i32
    %20 = arith.cmpi ne, %19, %c0_i32_10 : i32
    scf.if %20 {
      %24 = arith.index_cast %1 : i32 to index
      %c0_13 = arith.constant 0 : index
      %25 = vector.load %arg3[%24, %c0_13] : memref<256x16xf32, #tpu.memory_space<vmem>>, vector<128x16xf32>
      %c0_14 = arith.constant 0 : index
      %c0_15 = arith.constant 0 : index
      %26 = vector.load %arg6[%c0_14, %c0_15] : memref<16x32xf32, #tpu.memory_space<vmem>>, vector<16x32xf32>
      %cst_16 = arith.constant dense<0.000000e+00> : vector<128x32xf32>
      %27 = tpu.matmul %25, %26, %cst_16 {dimension_numbers = #tpu.dot_dimension_numbers<[1], [0], [0], [1], [0, 0, 1, 1], [], []>} : vector<128x16xf32>, vector<16x32xf32>, vector<128x32xf32> -> vector<128x32xf32>
      %28 = arith.addf %17, %27 : vector<128x32xf32>
      %c0_17 = arith.constant 0 : index
      %c0_18 = arith.constant 0 : index
      %29 = vector.load %arg7[%c0_17, %c0_18] : memref<1x32xf32, #tpu.memory_space<vmem>>, vector<1x32xf32>
      %30 = vector.broadcast %29 : vector<1x32xf32> to vector<128x32xf32>
      %31 = arith.addf %28, %30 : vector<128x32xf32>
      %cst_19 = arith.constant 0.000000e+00 : f32
      %32 = vector.broadcast %cst_19 : f32 to vector<128x32xf32>
      %33 = arith.maximumf %31, %32 : vector<128x32xf32>
      %34 = arith.index_cast %1 : i32 to index
      %c0_20 = arith.constant 0 : index
      %35 = vector.load %arg17[%34, %c0_20] : memref<256x32xf32, #tpu.memory_space<vmem>>, vector<128x32xf32>
      tpu.vector_store %arg17[%34, %c0_20], %33 {strides = array<i32>} : memref<256x32xf32, #tpu.memory_space<vmem>>, vector<128x32xf32>,
      %c0_21 = arith.constant 0 : index
      %c0_22 = arith.constant 0 : index
      %36 = vector.load %arg13[%c0_21, %c0_22] : memref<128x32xf32, #tpu.memory_space<vmem>>, vector<128x32xf32>
      tpu.vector_store %arg13[%c0_21, %c0_22], %33 {strides = array<i32>} : memref<128x32xf32, #tpu.memory_space<vmem>>, vector<128x32xf32>,
      %cst_23 = arith.constant 0.000000e+00 : f32
      %37 = vector.broadcast %cst_23 : f32 to vector<128x32xf32>
      %c0_24 = arith.constant 0 : index
      %c0_25 = arith.constant 0 : index
      %38 = vector.load %arg14[%c0_24, %c0_25] : memref<128x32xf32, #tpu.memory_space<vmem>>, vector<128x32xf32>
      tpu.vector_store %arg14[%c0_24, %c0_25], %37 {strides = array<i32>} : memref<128x32xf32, #tpu.memory_space<vmem>>, vector<128x32xf32>,
      %cst_26 = arith.constant 0.000000e+00 : f32
      %39 = vector.broadcast %cst_26 : f32 to vector<128x1xf32>
      %c0_27 = arith.constant 0 : index
      %c0_28 = arith.constant 0 : index
      %40 = vector.load %arg15[%c0_27, %c0_28] : memref<128x1xf32, #tpu.memory_space<vmem>>, vector<128x1xf32>
      tpu.vector_store %arg15[%c0_27, %c0_28], %39 {strides = array<i32>} : memref<128x1xf32, #tpu.memory_space<vmem>>, vector<128x1xf32>,
    } else {
    }
    %c1_i32_11 = arith.constant 1 : i32
    %21 = arith.cmpi eq, %arg0, %c1_i32_11 : i32
    %22 = arith.extui %21 : i1 to i32
    %c0_i32_12 = arith.constant 0 : i32
    %23 = arith.cmpi ne, %22, %c0_i32_12 : i32
    scf.if %23 {
      %24 = arith.index_cast %1 : i32 to index
      %c0_13 = arith.constant 0 : index
      %25 = vector.load %arg17[%24, %c0_13] : memref<256x32xf32, #tpu.memory_space<vmem>>, vector<128x32xf32>
      %c0_14 = arith.constant 0 : index
      %c0_15 = arith.constant 0 : index
      %26 = vector.load %arg9[%c0_14, %c0_15] : memref<32x32xf32, #tpu.memory_space<vmem>>, vector<32x32xf32>
      %cst_16 = arith.constant dense<0.000000e+00> : vector<128x32xf32>
      %27 = tpu.matmul %25, %26, %cst_16 {dimension_numbers = #tpu.dot_dimension_numbers<[1], [0], [0], [1], [0, 0, 1, 1], [], []>} : vector<128x32xf32>, vector<32x32xf32>, vector<128x32xf32> -> vector<128x32xf32>
      %28 = arith.addf %17, %27 : vector<128x32xf32>
      %c0_17 = arith.constant 0 : index
      %c0_18 = arith.constant 0 : index
      %29 = vector.load %arg10[%c0_17, %c0_18] : memref<1x32xf32, #tpu.memory_space<vmem>>, vector<1x32xf32>
      %30 = vector.broadcast %29 : vector<1x32xf32> to vector<128x32xf32>
      %31 = arith.addf %28, %30 : vector<128x32xf32>
      %c0_19 = arith.constant 0 : index
      %c0_20 = arith.constant 0 : index
      %32 = vector.load %arg11[%c0_19, %c0_20] : memref<32x1xf32, #tpu.memory_space<vmem>>, vector<32x1xf32>
      %cst_21 = arith.constant dense<0.000000e+00> : vector<128x1xf32>
      %33 = tpu.matmul %31, %32, %cst_21 {dimension_numbers = #tpu.dot_dimension_numbers<[1], [0], [0], [1], [0, 0, 1, 1], [], []>} : vector<128x32xf32>, vector<32x1xf32>, vector<128x1xf32> -> vector<128x1xf32>
      %c0_22 = arith.constant 0 : index
      %c0_23 = arith.constant 0 : index
      %34 = vector.load %arg12[%c0_22, %c0_23] : memref<1x1xf32, #tpu.memory_space<vmem>>, vector<1x1xf32>
      %35 = vector.broadcast %34 : vector<1x1xf32> to vector<128x1xf32>
      %36 = arith.addf %33, %35 : vector<128x1xf32>
      %c0_24 = arith.constant 0 : index
      %c0_25 = arith.constant 0 : index
      %37 = vector.load %arg13[%c0_24, %c0_25] : memref<128x32xf32, #tpu.memory_space<vmem>>, vector<128x32xf32>
      tpu.vector_store %arg13[%c0_24, %c0_25], %25 {strides = array<i32>} : memref<128x32xf32, #tpu.memory_space<vmem>>, vector<128x32xf32>,
      %c0_26 = arith.constant 0 : index
      %c0_27 = arith.constant 0 : index
      %38 = vector.load %arg14[%c0_26, %c0_27] : memref<128x32xf32, #tpu.memory_space<vmem>>, vector<128x32xf32>
      tpu.vector_store %arg14[%c0_26, %c0_27], %31 {strides = array<i32>} : memref<128x32xf32, #tpu.memory_space<vmem>>, vector<128x32xf32>,
      %c0_28 = arith.constant 0 : index
      %c0_29 = arith.constant 0 : index
      %39 = vector.load %arg15[%c0_28, %c0_29] : memref<128x1xf32, #tpu.memory_space<vmem>>, vector<128x1xf32>
      tpu.vector_store %arg15[%c0_28, %c0_29], %36 {strides = array<i32>} : memref<128x1xf32, #tpu.memory_space<vmem>>, vector<128x1xf32>,
    } else {
    }
    return
  }
  func.func @transform_0(%arg0: i32, %arg1: i32) -> (i32, i32) {
    %c0_i32 = arith.constant 0 : i32
    %c0_i32_0 = arith.constant 0 : i32
    return %arg1, %c0_i32 : i32, i32
  }
  func.func @transform_1(%arg0: i32, %arg1: i32) -> (i32, i32) {
    %c0_i32 = arith.constant 0 : i32
    %c0_i32_0 = arith.constant 0 : i32
    %c0_i32_1 = arith.constant 0 : i32
    return %c0_i32, %c0_i32_0 : i32, i32
  }
  func.func @transform_2(%arg0: i32, %arg1: i32) -> (i32, i32) {
    %c0_i32 = arith.constant 0 : i32
    %c0_i32_0 = arith.constant 0 : i32
    return %arg1, %c0_i32 : i32, i32
  }
  func.func @transform_3(%arg0: i32, %arg1: i32) -> (i32, i32) {
    %c0_i32 = arith.constant 0 : i32
    %c0_i32_0 = arith.constant 0 : i32
    %c0_i32_1 = arith.constant 0 : i32
    return %c0_i32, %c0_i32_0 : i32, i32
  }
  func.func @transform_4(%arg0: i32, %arg1: i32) -> (i32, i32) {
    %c0_i32 = arith.constant 0 : i32
    %c0_i32_0 = arith.constant 0 : i32
    %c0_i32_1 = arith.constant 0 : i32
    return %c0_i32, %c0_i32_0 : i32, i32
  }
  func.func @transform_5(%arg0: i32, %arg1: i32) -> (i32, i32) {
    %c0_i32 = arith.constant 0 : i32
    %c0_i32_0 = arith.constant 0 : i32
    %c0_i32_1 = arith.constant 0 : i32
    return %c0_i32, %c0_i32_0 : i32, i32
  }
  func.func @transform_6(%arg0: i32, %arg1: i32) -> (i32, i32) {
    %c0_i32 = arith.constant 0 : i32
    %c0_i32_0 = arith.constant 0 : i32
    %c0_i32_1 = arith.constant 0 : i32
    return %c0_i32, %c0_i32_0 : i32, i32
  }
  func.func @transform_7(%arg0: i32, %arg1: i32) -> (i32, i32) {
    %c0_i32 = arith.constant 0 : i32
    %c0_i32_0 = arith.constant 0 : i32
    %c0_i32_1 = arith.constant 0 : i32
    return %c0_i32, %c0_i32_0 : i32, i32
  }
  func.func @transform_8(%arg0: i32, %arg1: i32) -> (i32, i32) {
    %c0_i32 = arith.constant 0 : i32
    %c0_i32_0 = arith.constant 0 : i32
    %c0_i32_1 = arith.constant 0 : i32
    return %c0_i32, %c0_i32_0 : i32, i32
  }
  func.func @transform_9(%arg0: i32, %arg1: i32) -> (i32, i32) {
    %c0_i32 = arith.constant 0 : i32
    %c0_i32_0 = arith.constant 0 : i32
    %c0_i32_1 = arith.constant 0 : i32
    return %c0_i32, %c0_i32_0 : i32, i32
  }
  func.func @transform_10(%arg0: i32, %arg1: i32) -> (i32, i32) {
    %c0_i32 = arith.constant 0 : i32
    %c0_i32_0 = arith.constant 0 : i32
    %c0_i32_1 = arith.constant 0 : i32
    return %c0_i32, %c0_i32_0 : i32, i32
  }
  func.func @transform_11(%arg0: i32, %arg1: i32) -> (i32, i32) {
    %c0_i32 = arith.constant 0 : i32
    %c0_i32_0 = arith.constant 0 : i32
    return %arg1, %c0_i32 : i32, i32
  }
  func.func @transform_12(%arg0: i32, %arg1: i32) -> (i32, i32) {
    %c0_i32 = arith.constant 0 : i32
    %c0_i32_0 = arith.constant 0 : i32
    return %arg1, %c0_i32 : i32, i32
  }
  func.func @transform_13(%arg0: i32, %arg1: i32) -> (i32, i32) {
    %c0_i32 = arith.constant 0 : i32
    %c0_i32_0 = arith.constant 0 : i32
    return %arg1, %c0_i32 : i32, i32
  }
}

</mosaic_0001>

<bundles_post_ra>
// kernel: tpu_custom_call.1
= control target key start
LH: loop header
LB: loop body
LE: loop exit
PB: predicated region body
PF: predicated region fallthrough
CT: control target
= control target key end

     0   :  { %s4449_s0 = inlined_call_operand.vmem [shape: f32[256,256], index: 0, kind: input, shape index: {}]   ;;  %s4450_s1 = inlined_call_operand.vmem [shape: f32[256,16], index: 1, kind: input, shape index: {}]   ;;  %s4451_s2 = inlined_call_operand.vmem [shape: f32[256,1], index: 2, kind: input, shape index: {}]   ;;  %s4452_s3 = inlined_call_operand.vmem [shape: f32[16,32], index: 3, kind: input, shape index: {}]   ;;  %s4453_s4 = inlined_call_operand.hbm [shape: f32[16,32], index: 4, kind: input, shape index: {}]   ;;  %s4454_s5 = inlined_call_operand.vmem [shape: f32[1,32], index: 5, kind: input, shape index: {}]   ;;  %s4455_s6 = inlined_call_operand.vmem [shape: f32[32,32], index: 6, kind: input, shape index: {}]   ;;  %s4456_s7 = inlined_call_operand.hbm [shape: f32[32,32], index: 7, kind: input, shape index: {}]   ;;  %s4457_s8 = inlined_call_operand.vmem [shape: f32[1,32], index: 8, kind: input, shape index: {}]   ;;  %s4458_s9 = inlined_call_operand.vmem [shape: f32[32,1], index: 9, kind: input, shape index: {}]   ;;  %s4459_s10 = inlined_call_operand.<no memory space> [shape: f32[1,1], index: 10, kind: input, shape index: {}]   ;;  %s4460_s11 = inlined_call_operand.vmem [shape: f32[256,32], index: 11, kind: output, shape index: {0}]   ;;  %s4461_s12 = inlined_call_operand.vmem [shape: f32[256,32], index: 12, kind: output, shape index: {1}]   ;;  %s4462_s13 = inlined_call_operand.vmem [shape: f32[256,1], index: 13, kind: output, shape index: {2}]  }
   0x1   :  { %4469 = sst [smem:[#allocation16_spill]] %s4457_s8  ;;  %v19_v0 = vstv %s4459_s10 }
   0x2   :  { %20 = vst [vmem:[#allocation4] sm:$0x1] %v19_v0 }
   0x3   :  { %21 = vsyncpa [#allocation6], 0 }
   0x4   :  { %22 = vsyncpa [#allocation8], 0  ;;  %s3563_s27 = smov 0   ;;  %s3565_s28 = smov 0  }
   0x5   :  { %s3567_s29 = smov 0   ;;  %s3569_s30 = smov 0  }
   0x6   :  { %s3571_s14 = smov 0  }
   0x7 LB: > { %4470 = sst [smem:[#allocation11_spill]] %s3474_s29  ;;  %s2676_s10 = sadd.s32 4294967295, %s3482_s14   ;;  %s3482_s14 = sphi %s3571_s14, %s28_s14   ;;  %s3478_s30 = sphi %s3569_s30, %s4485_s30   ;;  %s3474_s29 = sphi %s3567_s29, %s4484_s29   ;;  %s3470_s28 = sphi %s3565_s28, %s4483_s28   ;;  %s3466_s27 = sphi %s3563_s27, %s4482_s27  }
   0x8   : > { %4471 = sst [smem:[#allocation12_spill]] %s3478_s30  ;;  %s37_s15 = sadd.s32 1, %s3474_s29 }
   0x9   : > { %4472 = sst [smem:[#allocation13_spill]] %s3482_s14  ;;  %p38_p0 = scmp.ge.s32.totalorder %s37_s15, 2 }
   0xa   : > { %s40_s16 = sadd.s32 1, %s3478_s30  ;;  %p2678_p1 = scmp.ge.s32.totalorder %s3482_s14, 1 }
   0xb   : > { %p364_p2 = scmp.lt.s32.totalorder %s3482_s14, 5  ;;  %s4487_s15 = smov (%p38_p0, %s37_s15), 0 }
   0xc   : > { %4473 = sst [smem:[#allocation14_spill]] %s4487_s15  ;;  %s4489_s16 = smov (!%p38_p0, %s40_s16), %s3478_s30 }
   0xd   : > { %p3596_p3 = pnand %p2678_p1, %p364_p2  ;;  %p42_p4 = scmp.ge.s32.totalorder %s4489_s16, 2 }
   0xe   : > { %p3600_p5 = scmp.eq.s32.totalorder %s2676_s10, 0  ;;  %s3484_s19 = smov [#allocation5]  }
   0xf   : > { %s4474_s17 = scalar_select %p3596_p3, 1, 0 }
  0x10   : > { %s4475_s18 = scalar_select %p3600_p5, 1, 0 }
  0x11   : > { %p3321_p6 = pneg %p3596_p3  ;;  %s4491_s16 = smov (%p42_p4, %s4489_s16), 0 }
  0x12   : > { %4476 = sst [smem:[#allocation15_spill]] %s4491_s16  ;;  %s382_s20 = sshll.u32 %s3484_s19, 4  ;;  %s383_s20 = int_to_ptr.vmem [resolvable:$true] %s382_s20 }
  0x13   : > { %p3610_p7 = pnand %p3600_p5, %p3321_p6  ;;  %s3380_s24 = scalar_lea.hbm %s4453_s4, 256 }
  0x14   : > { %p3381_p8 = scmp.ne.s32.totalorder %s4453_s4, %s3380_s24  ;;  %p3387_p12 = scmp.lt.u32.totalorder %s3380_s24, %s4453_s4 }
  0x15   : > { %p3382_p9 = pneg %p3610_p7 }
  0x17   : > { %p3383_p10 = pnand %p3382_p9, %p3381_p8 }
  0x19   : > { %p3384_p11 = pneg %p3383_p10 }
  0x1b   : > { %p3389_p13 = pnand %p3387_p12, %p3384_p11 }
  0x1d   : > { %3392 = shalt.err (!%p3389_p13)
}
  0x1e   : > { %s3393_s16 = scalar_lea.vmem %s383_s20, 256  ;;  %p3401_p4 = scmp.lt.s32.totalorder %s383_s20, %s383_s20 }
  0x1f   : > { %p3394_p0 = scmp.ne.s32.totalorder %s383_s20, %s3393_s16  ;;  %p3402_p6 = scmp.lt.s32.totalorder %s3393_s16, %s3393_s16 }
  0x21   : > { %p3396_p1 = pnand %p3394_p0, %p3382_p9  ;;  %p3403_p5 = por %p3402_p6, %p3401_p4 }
  0x23   : > { %p3397_p2 = pneg %p3396_p1 }
  0x25   : > { %p3404_p3 = pnand %p3403_p5, %p3397_p2 }
  0x27   : > { %3407 = shalt.err (!%p3404_p3)
}
  0x28   : > { %s3485_s22 = smov 128   ;;  %s3486_s23 = smov 8  }
  0x29   : > { %3324 = dma.hbm_to_vmem [thread:$0]  (!%p3610_p7), %s4453_s4, 256, %s383_s20, [#allocation6], %s3485_s22, %s3485_s22, %s3486_s23  }
  0x2a   : > { %s3487_s26 = smov [#allocation7]   ;;  %s3408_s30 = scalar_lea.hbm %s4456_s7, 512 }
  0x2b   : > { %s401_s10 = sshll.u32 %s3487_s26, 4  ;;  %p3409_p3 = scmp.ne.s32.totalorder %s4456_s7, %s3408_s30  ;;  %s402_s10 = int_to_ptr.vmem [resolvable:$true] %s401_s10 }
  0x2c   : > { %p3415_p10 = scmp.lt.u32.totalorder %s3408_s30, %s4456_s7 }
  0x2d   : > { %p3411_p5 = pnand %p3409_p3, %p3382_p9 }
  0x2f   : > { %p3412_p8 = pneg %p3411_p5 }
  0x31   : > { %p3417_p11 = pnand %p3415_p10, %p3412_p8 }
  0x33   : > { %3420 = shalt.err (!%p3417_p11)
}
  0x34   : > { %s3421_s20 = scalar_lea.vmem %s402_s10, 512  ;;  %p3429_p1 = scmp.lt.s32.totalorder %s402_s10, %s402_s10 }
  0x35   : > { %p3422_p12 = scmp.ne.s32.totalorder %s402_s10, %s3421_s20  ;;  %p3430_p2 = scmp.lt.s32.totalorder %s3421_s20, %s3421_s20 }
  0x37   : > { %p3424_p13 = pnand %p3422_p12, %p3382_p9  ;;  %p3431_p4 = por %p3430_p2, %p3429_p1 }
  0x39   : > { %p3425_p0 = pneg %p3424_p13 }
  0x3b   : > { %p3432_p6 = pnand %p3431_p4, %p3425_p0 }
  0x3d   : > { %3435 = shalt.err (!%p3432_p6)
}
  0x3e   : > { %3327 = dma.hbm_to_vmem [thread:$0]  (!%p3610_p7), %s4456_s7, 512, %s402_s10, [#allocation8], %s3485_s22, %s3485_s22, %s3486_s23  }
  0x3f   : > { %p4478_p3 = scmp.ne.s32.totalorder %s4474_s17, 0 }
  0x40   : > { %p4479_p5 = scmp.ne.s32.totalorder (!%p4478_p3), %s4475_s18, 0 }
  0x41   : > { %445 = sbr.rel (%p4478_p3) target bundleno = 1579 (0x62b), region = 64 }
  0x48   : > { %3457 = dma.done.wait (%p4479_p5), [#allocation6], 256  }
  0x49   : > { %3459 = vsyncadd (%p4479_p5), [#allocation6], 4294967040 }
  0x4a   : > { %3461 = dma.done.wait (%p4479_p5), [#allocation8], 512  }
  0x4b   : > { %3463 = vsyncadd (%p4479_p5), [#allocation8], 4294966784  ;;  %s2685_s8 = sshll.u32 %s3466_s27, 4  ;;  %s3668_s30 = sshll.u32 %s3466_s27, 7 }
  0x4c   : > { %p510_p7 = scmp.lt.s32.totalorder %s2685_s8, 31  ;;  %p541_p9 = scmp.eq.s32.totalorder %s3470_s28, 0 }
  0x4d   : > { %p542_p8 = scmp.eq.s32.totalorder %s3466_s27, 0 }
  0x4e   : > { %s4493_s8 = smov (!%p510_p7, %s2685_s8), 31 }
  0x4f   : > { %p543_p10 = pnand %p542_p8, %p541_p9  ;;  %s2816_s14 = sshll.u32 %s4493_s8, 4 }
  0x50   : > { %s2689_s17 = sshll.u32 %s4493_s8, 3  ;;  %s3677_s18 = scalar_lea.vmem %s4449_s0, %s2816_s14  ;;  %v579_v1 = vld [vmem:[%s4452_s3] sm:$0xff] (!%p543_p10)  ;;  %v580_v2 = vld [vmem:[%s4452_s3 + $0x8] sm:$0xff] (!%p543_p10)  ;;  %vm581_vm0 = vcmask (!%p543_p10), 130048   ;;  %v549_v8 = vld [vmem:[%s4450_s1 + $0x10] sm:$0xff] (!%p543_p10)  ;;  %vm903_vm1 = vcmask (!%p543_p10), 261120  }
  0x51   : > { %s3682_s25 = scalar_lea.vmem %s4451_s2, %s2689_s17  ;;  %s3687_s19 = scalar_lea.vmem %s4460_s11, %s2689_s17  ;;  %v547_v3 = vld [vmem:[%s4450_s1] sm:$0xff] (!%p543_p10)  ;;  %v3225_v4 = vpack.c.bf16 (!%p543_p10), %v580_v2, %v579_v1  ;;  %v548_v6 = vld [vmem:[%s4450_s1 + $0x8] sm:$0xff] (!%p543_p10)  ;;  %v565_v9 = vld [vmem:[%s4450_s1 + $0x90] sm:$0xff] (!%p543_p10) }
  0x52   : > { %s3692_s29 = scalar_lea.vmem %s4461_s12, %s2689_s17  ;;  %s3697_s14 = scalar_lea.vmem %s4462_s13, %s2689_s17  ;;  %3029 = vmatprep.mubr.msk.f32.mxu0 (!%p543_p10), %vm581_vm0, %v547_v3  ;;  %v563_v5 = vld [vmem:[%s4450_s1 + $0x80] sm:$0xff] (!%p543_p10)  ;;  %v564_v7 = vld [vmem:[%s4450_s1 + $0x88] sm:$0xff] (!%p543_p10)  ;;  %v550_v10 = vld [vmem:[%s4450_s1 + $0x18] sm:$0xff] (!%p543_p10) }
  0x53   : > { %546 = sbr.rel (%p543_p10) target bundleno = 330 (0x14a), region = 76  ;;  %3053 = vmatprep.mubr.msk.f32.mxu1 (!%p543_p10), %vm581_vm0, %v563_v5  ;;  %3226 = vmatprep.subr.bf16.mxu0 (!%p543_p10), %v3225_v4  ;;  %v566_v11 = vld [vmem:[%s4450_s1 + $0x98] sm:$0xff] (!%p543_p10)  ;;  %v551_v12 = vld [vmem:[%s4450_s1 + $0x20] sm:$0xff] (!%p543_p10)  ;;  %v552_v14 = vld [vmem:[%s4450_s1 + $0x28] sm:$0xff] (!%p543_p10) }
  0x54   : > { %3289 = vmatprep.subr.bf16.mxu1 (!%p543_p10), %v3225_v4  ;;  %3228 = vmatpush3.bf16.msra.mxu0 (!%p543_p10), %v3225_v4  ;;  %v567_v13 = vld [vmem:[%s4450_s1 + $0xa0] sm:$0xff] (!%p543_p10)  ;;  %v568_v15 = vld [vmem:[%s4450_s1 + $0xa8] sm:$0xff] (!%p543_p10)  ;;  %v553_v16 = vld [vmem:[%s4450_s1 + $0x30] sm:$0xff] (!%p543_p10) }
  0x55   : > { %3290 = vmatpush3.bf16.msra.mxu1 (!%p543_p10), %v3225_v4  ;;  %v569_v17 = vld [vmem:[%s4450_s1 + $0xb0] sm:$0xff] (!%p543_p10)  ;;  %v554_v18 = vld [vmem:[%s4450_s1 + $0x38] sm:$0xff] (!%p543_p10)  ;;  %v555_v20 = vld [vmem:[%s4450_s1 + $0x40] sm:$0xff] (!%p543_p10) }
  0x56   : > { %v570_v19 = vld [vmem:[%s4450_s1 + $0xb8] sm:$0xff] (!%p543_p10)  ;;  %v571_v21 = vld [vmem:[%s4450_s1 + $0xc0] sm:$0xff] (!%p543_p10)  ;;  %v556_v22 = vld [vmem:[%s4450_s1 + $0x48] sm:$0xff] (!%p543_p10) }
  0x57   : > { %3030 = vmatmul.mubr.msk.f32.vlgmr.msra.gmra.mrb[0].mxu0 (!%p543_p10), %vm581_vm0, %v548_v6  ;;  %v572_v23 = vld [vmem:[%s4450_s1 + $0xc8] sm:$0xff] (!%p543_p10)  ;;  %v557_v24 = vld [vmem:[%s4450_s1 + $0x50] sm:$0xff] (!%p543_p10)  ;;  %v558_v26 = vld [vmem:[%s4450_s1 + $0x58] sm:$0xff] (!%p543_p10) }
  0x58   : > { %3054 = vmatmul.mubr.msk.f32.vlgmr.msra.gmra.mrb[0].mxu1 (!%p543_p10), %vm581_vm0, %v564_v7  ;;  %3032 = vmatprep.mubr.msk.f32.mxu0 (!%p543_p10), %vm581_vm0, %v549_v8  ;;  %v573_v25 = vld [vmem:[%s4450_s1 + $0xd0] sm:$0xff] (!%p543_p10)  ;;  %v574_v27 = vld [vmem:[%s4450_s1 + $0xd8] sm:$0xff] (!%p543_p10)  ;;  %v559_v28 = vld [vmem:[%s4450_s1 + $0x60] sm:$0xff] (!%p543_p10) }
  0x59   : > { %3056 = vmatprep.mubr.msk.f32.mxu1 (!%p543_p10), %vm581_vm0, %v565_v9  ;;  %v575_v29 = vld [vmem:[%s4450_s1 + $0xe0] sm:$0xff] (!%p543_p10)  ;;  %v560_v30 = vld [vmem:[%s4450_s1 + $0x68] sm:$0xff] (!%p543_p10)  ;;  %v561_v32 = vld [vmem:[%s4450_s1 + $0x70] sm:$0xff] (!%p543_p10) }
  0x5a   : > { %v576_v31 = vld [vmem:[%s4450_s1 + $0xe8] sm:$0xff]  ;;  %v577_v33 = vld [vmem:[%s4450_s1 + $0xf0] sm:$0xff]  ;;  %v562_v34 = vld [vmem:[%s4450_s1 + $0x78] sm:$0xff] }
  0x5b   : > { %3033 = vmatmul.mubr.msk.f32.gmra.mrb[2].mxu0 %vm581_vm0, %v550_v10  ;;  %v578_v35 = vld [vmem:[%s4450_s1 + $0xf8] sm:$0xff] }
  0x5c   : > { %3057 = vmatmul.mubr.msk.f32.gmra.mrb[2].mxu1 %vm581_vm0, %v566_v11  ;;  %3035 = vmatprep.mubr.msk.f32.mxu0 %vm581_vm0, %v551_v12 }
  0x5d   : > { %3059 = vmatprep.mubr.msk.f32.mxu1 %vm581_vm0, %v567_v13 }
  0x5f   : > { %3036 = vmatmul.mubr.msk.f32.gmra.mrb[4].mxu0 %vm581_vm0, %v552_v14 }
  0x60   : > { %3060 = vmatmul.mubr.msk.f32.gmra.mrb[4].mxu1 %vm581_vm0, %v568_v15  ;;  %3038 = vmatprep.mubr.msk.f32.mxu0 %vm581_vm0, %v553_v16 }
  0x61   : > { %3062 = vmatprep.mubr.msk.f32.mxu1 %vm581_vm0, %v569_v17 }
  0x63   : > { %3039 = vmatmul.mubr.msk.f32.gmra.mrb[6].mxu0 %vm581_vm0, %v554_v18 }
  0x64   : > { %3063 = vmatmul.mubr.msk.f32.gmra.mrb[6].mxu1 %vm581_vm0, %v570_v19  ;;  %3041 = vmatprep.mubr.msk.f32.mxu0 %vm581_vm0, %v555_v20 }
  0x65   : > { %3065 = vmatprep.mubr.msk.f32.mxu1 %vm581_vm0, %v571_v21 }
  0x67   : > { %3042 = vmatmul.mubr.msk.f32.gmra.mrb[8].mxu0 %vm581_vm0, %v556_v22 }
  0x68   : > { %3066 = vmatmul.mubr.msk.f32.gmra.mrb[8].mxu1 %vm581_vm0, %v572_v23  ;;  %3044 = vmatprep.mubr.msk.f32.mxu0 %vm581_vm0, %v557_v24 }
  0x69   : > { %3068 = vmatprep.mubr.msk.f32.mxu1 %vm581_vm0, %v573_v25 }
  0x6b   : > { %3045 = vmatmul.mubr.msk.f32.gmra.mrb[10].mxu0 %vm581_vm0, %v558_v26 }
  0x6c   : > { %3069 = vmatmul.mubr.msk.f32.gmra.mrb[10].mxu1 %vm581_vm0, %v574_v27  ;;  %3047 = vmatprep.mubr.msk.f32.mxu0 %vm581_vm0, %v559_v28 }
  0x6d   : > { %3071 = vmatprep.mubr.msk.f32.mxu1 %vm581_vm0, %v575_v29 }
  0x6f   : > { %3048 = vmatmul.mubr.msk.f32.gmra.mrb[12].mxu0 %vm581_vm0, %v560_v30 }
  0x70   : > { %3072 = vmatmul.mubr.msk.f32.gmra.mrb[12].mxu1 %vm581_vm0, %v576_v31  ;;  %3050 = vmatprep.mubr.msk.f32.mxu0 %vm581_vm0, %v561_v32 }
  0x71   : > { %3074 = vmatprep.mubr.msk.f32.mxu1 %vm581_vm0, %v577_v33 }
  0x73   : > { %3051 = vmatmul.mubr.msk.f32.gmra.mrb[14].mxu0 %vm581_vm0, %v562_v34 }
  0x74   : > { %3075 = vmatmul.mubr.msk.f32.gmra.mrb[14].mxu1 %vm581_vm0, %v578_v35 }
 0x12a   : > { %v3031_v36 = vpop.f32.mrb[0].mxu0 }
 0x12b   : > { %v3055_v37 = vpop.f32.mrb[0].mxu1  ;;  %905 = vst.msk [vmem:[#allocation2 + $0x8] sm:$0xff] %vm903_vm1, %v3031_v36  ;;  %v744_v38 = vpop.f32.mrb[1].mxu0 }
 0x12c   : > { %921 = vst.msk [vmem:[#allocation2 + $0x88] sm:$0xff] %vm903_vm1, %v3055_v37  ;;  %v824_v39 = vpop.f32.mrb[1].mxu1  ;;  %904 = vst.msk [vmem:[#allocation2] sm:$0xff] %vm903_vm1, %v744_v38 }
 0x12d   : > { %920 = vst.msk [vmem:[#allocation2 + $0x80] sm:$0xff] %vm903_vm1, %v824_v39 }
 0x12e   : > { %v3034_v40 = vpop.f32.mrb[2].mxu0 }
 0x12f   : > { %v3058_v41 = vpop.f32.mrb[2].mxu1  ;;  %907 = vst.msk [vmem:[#allocation2 + $0x18] sm:$0xff] %vm903_vm1, %v3034_v40  ;;  %v754_v42 = vpop.f32.mrb[3].mxu0 }
 0x130   : > { %923 = vst.msk [vmem:[#allocation2 + $0x98] sm:$0xff] %vm903_vm1, %v3058_v41  ;;  %v834_v43 = vpop.f32.mrb[3].mxu1  ;;  %906 = vst.msk [vmem:[#allocation2 + $0x10] sm:$0xff] %vm903_vm1, %v754_v42 }
 0x131   : > { %922 = vst.msk [vmem:[#allocation2 + $0x90] sm:$0xff] %vm903_vm1, %v834_v43 }
 0x132   : > { %v3037_v44 = vpop.f32.mrb[4].mxu0 }
 0x133   : > { %v3061_v45 = vpop.f32.mrb[4].mxu1  ;;  %909 = vst.msk [vmem:[#allocation2 + $0x28] sm:$0xff] %vm903_vm1, %v3037_v44  ;;  %v764_v46 = vpop.f32.mrb[5].mxu0 }
 0x134   : > { %925 = vst.msk [vmem:[#allocation2 + $0xa8] sm:$0xff] %vm903_vm1, %v3061_v45  ;;  %v844_v47 = vpop.f32.mrb[5].mxu1  ;;  %908 = vst.msk [vmem:[#allocation2 + $0x20] sm:$0xff] %vm903_vm1, %v764_v46 }
 0x135   : > { %924 = vst.msk [vmem:[#allocation2 + $0xa0] sm:$0xff] %vm903_vm1, %v844_v47 }
 0x136   : > { %v3040_v48 = vpop.f32.mrb[6].mxu0 }
 0x137   : > { %v3064_v49 = vpop.f32.mrb[6].mxu1  ;;  %911 = vst.msk [vmem:[#allocation2 + $0x38] sm:$0xff] %vm903_vm1, %v3040_v48  ;;  %v774_v50 = vpop.f32.mrb[7].mxu0 }
 0x138   : > { %927 = vst.msk [vmem:[#allocation2 + $0xb8] sm:$0xff] %vm903_vm1, %v3064_v49  ;;  %v854_v51 = vpop.f32.mrb[7].mxu1  ;;  %910 = vst.msk [vmem:[#allocation2 + $0x30] sm:$0xff] %vm903_vm1, %v774_v50 }
 0x139   : > { %926 = vst.msk [vmem:[#allocation2 + $0xb0] sm:$0xff] %vm903_vm1, %v854_v51 }
 0x13a   : > { %v3043_v52 = vpop.f32.mrb[8].mxu0 }
 0x13b   : > { %v3067_v53 = vpop.f32.mrb[8].mxu1  ;;  %913 = vst.msk [vmem:[#allocation2 + $0x48] sm:$0xff] %vm903_vm1, %v3043_v52  ;;  %v784_v54 = vpop.f32.mrb[9].mxu0 }
 0x13c   : > { %929 = vst.msk [vmem:[#allocation2 + $0xc8] sm:$0xff] %vm903_vm1, %v3067_v53  ;;  %v864_v55 = vpop.f32.mrb[9].mxu1  ;;  %912 = vst.msk [vmem:[#allocation2 + $0x40] sm:$0xff] %vm903_vm1, %v784_v54 }
 0x13d   : > { %928 = vst.msk [vmem:[#allocation2 + $0xc0] sm:$0xff] %vm903_vm1, %v864_v55 }
 0x13e   : > { %v3046_v56 = vpop.f32.mrb[10].mxu0 }
 0x13f   : > { %v3070_v57 = vpop.f32.mrb[10].mxu1  ;;  %915 = vst.msk [vmem:[#allocation2 + $0x58] sm:$0xff] %vm903_vm1, %v3046_v56  ;;  %v794_v58 = vpop.f32.mrb[11].mxu0 }
 0x140   : > { %931 = vst.msk [vmem:[#allocation2 + $0xd8] sm:$0xff] %vm903_vm1, %v3070_v57  ;;  %v874_v59 = vpop.f32.mrb[11].mxu1  ;;  %914 = vst.msk [vmem:[#allocation2 + $0x50] sm:$0xff] %vm903_vm1, %v794_v58 }
 0x141   : > { %930 = vst.msk [vmem:[#allocation2 + $0xd0] sm:$0xff] %vm903_vm1, %v874_v59 }
 0x142   : > { %v3049_v60 = vpop.f32.mrb[12].mxu0 }
 0x143   : > { %v3073_v61 = vpop.f32.mrb[12].mxu1  ;;  %917 = vst.msk [vmem:[#allocation2 + $0x68] sm:$0xff] %vm903_vm1, %v3049_v60  ;;  %v804_v62 = vpop.f32.mrb[13].mxu0 }
 0x144   : > { %933 = vst.msk [vmem:[#allocation2 + $0xe8] sm:$0xff] %vm903_vm1, %v3073_v61  ;;  %v884_v63 = vpop.f32.mrb[13].mxu1  ;;  %916 = vst.msk [vmem:[#allocation2 + $0x60] sm:$0xff] %vm903_vm1, %v804_v62 }
 0x145   : > { %932 = vst.msk [vmem:[#allocation2 + $0xe0] sm:$0xff] %vm903_vm1, %v884_v63 }
 0x146   : > { %v3052_v0 = vpop.f32.mrb[14].mxu0 }
 0x147   : > { %v3076_v1 = vpop.f32.mrb[14].mxu1  ;;  %919 = vst.msk [vmem:[#allocation2 + $0x78] sm:$0xff] %vm903_vm1, %v3052_v0  ;;  %v814_v2 = vpop.f32.mrb[15].mxu0 }
 0x148   : > { %935 = vst.msk [vmem:[#allocation2 + $0xf8] sm:$0xff] %vm903_vm1, %v3076_v1  ;;  %v894_v3 = vpop.f32.mrb[15].mxu1  ;;  %918 = vst.msk [vmem:[#allocation2 + $0x70] sm:$0xff] %vm903_vm1, %v814_v2 }
 0x149   : > { %934 = vst.msk [vmem:[#allocation2 + $0xf0] sm:$0xff] %vm903_vm1, %v894_v3 }
 0x14a PF: > { %p936_p11 = scmp.eq.s32.totalorder %s3470_s28, 1 }
 0x14c   : > { %p937_p12 = pnand %p936_p11, %p542_p8 }
 0x14d   : > { %v973_v4 = vld [vmem:[%s4455_s6] sm:$0xff] (!%p937_p12)  ;;  %v974_v5 = vld [vmem:[%s4455_s6 + $0x8] sm:$0xff] (!%p937_p12)  ;;  %v975_v6 = vld [vmem:[%s4455_s6 + $0x10] sm:$0xff] (!%p937_p12)  ;;  %vm977_vm2 = vcmask (!%p937_p12), 261120  }
 0x14e   : > { %940 = sbr.rel (%p937_p12) target bundleno = 587 (0x24b), region = 80  ;;  %v3229_v7 = vpack.c.bf16 (!%p937_p12), %v974_v5, %v973_v4  ;;  %v976_v8 = vld [vmem:[%s4455_s6 + $0x18] sm:$0xff] (!%p937_p12)  ;;  %v941_v9 = vld [vmem:[#allocation3] sm:$0xff] (!%p937_p12)  ;;  %v942_v12 = vld [vmem:[#allocation3 + $0x8] sm:$0xff] (!%p937_p12) }
 0x14f   : > { %v957_v10 = vld [vmem:[#allocation3 + $0x80] sm:$0xff] (!%p937_p12)  ;;  %v3233_v11 = vpack.c.bf16 (!%p937_p12), %v976_v8, %v975_v6  ;;  %3085 = vmatprep.mubr.msk.f32.mxu0 (!%p937_p12), %vm977_vm2, %v941_v9  ;;  %v958_v13 = vld [vmem:[#allocation3 + $0x88] sm:$0xff] (!%p937_p12)  ;;  %v943_v14 = vld [vmem:[#allocation3 + $0x10] sm:$0xff] (!%p937_p12) }
 0x150   : > { %3109 = vmatprep.mubr.msk.f32.mxu1 (!%p937_p12), %vm977_vm2, %v957_v10  ;;  %3230 = vmatprep.subr.bf16.mxu0 (!%p937_p12), %v3229_v7  ;;  %v959_v15 = vld [vmem:[#allocation3 + $0x90] sm:$0xff] (!%p937_p12)  ;;  %v944_v16 = vld [vmem:[#allocation3 + $0x18] sm:$0xff] (!%p937_p12)  ;;  %v945_v18 = vld [vmem:[#allocation3 + $0x20] sm:$0xff] (!%p937_p12) }
 0x151   : > { %3291 = vmatprep.subr.bf16.mxu1 (!%p937_p12), %v3229_v7  ;;  %3232 = vmatpush3.bf16.msra.mxu0 (!%p937_p12), %v3229_v7  ;;  %v960_v17 = vld [vmem:[#allocation3 + $0x98] sm:$0xff] (!%p937_p12)  ;;  %v961_v19 = vld [vmem:[#allocation3 + $0xa0] sm:$0xff] (!%p937_p12)  ;;  %v946_v20 = vld [vmem:[#allocation3 + $0x28] sm:$0xff] (!%p937_p12) }
 0x152   : > { %3293 = vmatpush3.bf16.msra.mxu1 (!%p937_p12), %v3229_v7  ;;  %3234 = vmatprep.subr.bf16.mxu0 (!%p937_p12), %v3233_v11  ;;  %v962_v21 = vld [vmem:[#allocation3 + $0xa8] sm:$0xff] (!%p937_p12)  ;;  %v947_v22 = vld [vmem:[#allocation3 + $0x30] sm:$0xff] (!%p937_p12)  ;;  %v948_v24 = vld [vmem:[#allocation3 + $0x38] sm:$0xff] (!%p937_p12) }
 0x153   : > { %3292 = vmatprep.subr.bf16.mxu1 (!%p937_p12), %v3233_v11  ;;  %v963_v23 = vld [vmem:[#allocation3 + $0xb0] sm:$0xff] (!%p937_p12)  ;;  %v964_v25 = vld [vmem:[#allocation3 + $0xb8] sm:$0xff] (!%p937_p12)  ;;  %v949_v26 = vld [vmem:[#allocation3 + $0x40] sm:$0xff] (!%p937_p12) }
 0x154   : > { %v965_v27 = vld [vmem:[#allocation3 + $0xc0] sm:$0xff] (!%p937_p12)  ;;  %v950_v28 = vld [vmem:[#allocation3 + $0x48] sm:$0xff] (!%p937_p12)  ;;  %v951_v30 = vld [vmem:[#allocation3 + $0x50] sm:$0xff] (!%p937_p12) }
 0x155   : > { %3236 = vmatpush3.bf16.msra.mxu0 %v3233_v11  ;;  %v966_v29 = vld [vmem:[#allocation3 + $0xc8] sm:$0xff]  ;;  %v967_v31 = vld [vmem:[#allocation3 + $0xd0] sm:$0xff]  ;;  %v952_v32 = vld [vmem:[#allocation3 + $0x58] sm:$0xff] }
 0x156   : > { %3294 = vmatpush3.bf16.msra.mxu1 %v3233_v11  ;;  %v968_v33 = vld [vmem:[#allocation3 + $0xd8] sm:$0xff]  ;;  %v953_v34 = vld [vmem:[#allocation3 + $0x60] sm:$0xff]  ;;  %v954_v36 = vld [vmem:[#allocation3 + $0x68] sm:$0xff] }
 0x157   : > { %v969_v35 = vld [vmem:[#allocation3 + $0xe0] sm:$0xff]  ;;  %v970_v37 = vld [vmem:[#allocation3 + $0xe8] sm:$0xff]  ;;  %v955_v38 = vld [vmem:[#allocation3 + $0x70] sm:$0xff] }
 0x158   : > { %3086 = vmatmul.mubr.msk.f32.vlgmr.msra.gmra.mrb[0].mxu0 %vm977_vm2, %v942_v12  ;;  %v971_v39 = vld [vmem:[#allocation3 + $0xf0] sm:$0xff]  ;;  %v956_v40 = vld [vmem:[#allocation3 + $0x78] sm:$0xff] }
 0x159   : > { %3110 = vmatmul.mubr.msk.f32.vlgmr.msra.gmra.mrb[0].mxu1 %vm977_vm2, %v958_v13  ;;  %3088 = vmatprep.mubr.msk.f32.mxu0 %vm977_vm2, %v943_v14  ;;  %v972_v41 = vld [vmem:[#allocation3 + $0xf8] sm:$0xff] }
 0x15a   : > { %3112 = vmatprep.mubr.msk.f32.mxu1 %vm977_vm2, %v959_v15 }
 0x15c   : > { %3089 = vmatmul.mubr.msk.f32.gmra.mrb[2].mxu0 %vm977_vm2, %v944_v16 }
 0x15d   : > { %3113 = vmatmul.mubr.msk.f32.gmra.mrb[2].mxu1 %vm977_vm2, %v960_v17  ;;  %3091 = vmatprep.mubr.msk.f32.mxu0 %vm977_vm2, %v945_v18 }
 0x15e   : > { %3115 = vmatprep.mubr.msk.f32.mxu1 %vm977_vm2, %v961_v19 }
 0x160   : > { %3092 = vmatmul.mubr.msk.f32.gmra.mrb[4].mxu0 %vm977_vm2, %v946_v20 }
 0x161   : > { %3116 = vmatmul.mubr.msk.f32.gmra.mrb[4].mxu1 %vm977_vm2, %v962_v21  ;;  %3094 = vmatprep.mubr.msk.f32.mxu0 %vm977_vm2, %v947_v22 }
 0x162   : > { %3118 = vmatprep.mubr.msk.f32.mxu1 %vm977_vm2, %v963_v23 }
 0x164   : > { %3095 = vmatmul.mubr.msk.f32.gmra.mrb[6].mxu0 %vm977_vm2, %v948_v24 }
 0x165   : > { %3119 = vmatmul.mubr.msk.f32.gmra.mrb[6].mxu1 %vm977_vm2, %v964_v25  ;;  %3097 = vmatprep.mubr.msk.f32.mxu0 %vm977_vm2, %v949_v26 }
 0x166   : > { %3121 = vmatprep.mubr.msk.f32.mxu1 %vm977_vm2, %v965_v27 }
 0x168   : > { %3098 = vmatmul.mubr.msk.f32.gmra.mrb[8].mxu0 %vm977_vm2, %v950_v28 }
 0x169   : > { %3122 = vmatmul.mubr.msk.f32.gmra.mrb[8].mxu1 %vm977_vm2, %v966_v29  ;;  %3100 = vmatprep.mubr.msk.f32.mxu0 %vm977_vm2, %v951_v30 }
 0x16a   : > { %3124 = vmatprep.mubr.msk.f32.mxu1 %vm977_vm2, %v967_v31 }
 0x16c   : > { %3101 = vmatmul.mubr.msk.f32.gmra.mrb[10].mxu0 %vm977_vm2, %v952_v32 }
 0x16d   : > { %3125 = vmatmul.mubr.msk.f32.gmra.mrb[10].mxu1 %vm977_vm2, %v968_v33  ;;  %3103 = vmatprep.mubr.msk.f32.mxu0 %vm977_vm2, %v953_v34 }
 0x16e   : > { %3127 = vmatprep.mubr.msk.f32.mxu1 %vm977_vm2, %v969_v35 }
 0x170   : > { %3104 = vmatmul.mubr.msk.f32.gmra.mrb[12].mxu0 %vm977_vm2, %v954_v36 }
 0x171   : > { %3128 = vmatmul.mubr.msk.f32.gmra.mrb[12].mxu1 %vm977_vm2, %v970_v37  ;;  %3106 = vmatprep.mubr.msk.f32.mxu0 %vm977_vm2, %v955_v38 }
 0x172   : > { %3130 = vmatprep.mubr.msk.f32.mxu1 %vm977_vm2, %v971_v39 }
 0x174   : > { %3107 = vmatmul.mubr.msk.f32.gmra.mrb[14].mxu0 %vm977_vm2, %v956_v40 }
 0x175   : > { %3131 = vmatmul.mubr.msk.f32.gmra.mrb[14].mxu1 %vm977_vm2, %v972_v41 }
 0x22b   : > { %v3087_v42 = vpop.f32.mrb[0].mxu0 }
 0x22c   : > { %v3111_v43 = vpop.f32.mrb[0].mxu1  ;;  %1300 = vst.msk [vmem:[#allocation2 + $0x8] sm:$0xff] %vm977_vm2, %v3087_v42  ;;  %v1140_v44 = vpop.f32.mrb[1].mxu0 }
 0x22d   : > { %1316 = vst.msk [vmem:[#allocation2 + $0x88] sm:$0xff] %vm977_vm2, %v3111_v43  ;;  %v1220_v45 = vpop.f32.mrb[1].mxu1  ;;  %1299 = vst.msk [vmem:[#allocation2] sm:$0xff] %vm977_vm2, %v1140_v44 }
 0x22e   : > { %1315 = vst.msk [vmem:[#allocation2 + $0x80] sm:$0xff] %vm977_vm2, %v1220_v45 }
 0x22f   : > { %v3090_v46 = vpop.f32.mrb[2].mxu0 }
 0x230   : > { %v3114_v47 = vpop.f32.mrb[2].mxu1  ;;  %1302 = vst.msk [vmem:[#allocation2 + $0x18] sm:$0xff] %vm977_vm2, %v3090_v46  ;;  %v1150_v48 = vpop.f32.mrb[3].mxu0 }
 0x231   : > { %1318 = vst.msk [vmem:[#allocation2 + $0x98] sm:$0xff] %vm977_vm2, %v3114_v47  ;;  %v1230_v49 = vpop.f32.mrb[3].mxu1  ;;  %1301 = vst.msk [vmem:[#allocation2 + $0x10] sm:$0xff] %vm977_vm2, %v1150_v48 }
 0x232   : > { %1317 = vst.msk [vmem:[#allocation2 + $0x90] sm:$0xff] %vm977_vm2, %v1230_v49 }
 0x233   : > { %v3093_v50 = vpop.f32.mrb[4].mxu0 }
 0x234   : > { %v3117_v51 = vpop.f32.mrb[4].mxu1  ;;  %1304 = vst.msk [vmem:[#allocation2 + $0x28] sm:$0xff] %vm977_vm2, %v3093_v50  ;;  %v1160_v52 = vpop.f32.mrb[5].mxu0 }
 0x235   : > { %1320 = vst.msk [vmem:[#allocation2 + $0xa8] sm:$0xff] %vm977_vm2, %v3117_v51  ;;  %v1240_v53 = vpop.f32.mrb[5].mxu1  ;;  %1303 = vst.msk [vmem:[#allocation2 + $0x20] sm:$0xff] %vm977_vm2, %v1160_v52 }
 0x236   : > { %1319 = vst.msk [vmem:[#allocation2 + $0xa0] sm:$0xff] %vm977_vm2, %v1240_v53 }
 0x237   : > { %v3096_v54 = vpop.f32.mrb[6].mxu0 }
 0x238   : > { %v3120_v55 = vpop.f32.mrb[6].mxu1  ;;  %1306 = vst.msk [vmem:[#allocation2 + $0x38] sm:$0xff] %vm977_vm2, %v3096_v54  ;;  %v1170_v56 = vpop.f32.mrb[7].mxu0 }
 0x239   : > { %1322 = vst.msk [vmem:[#allocation2 + $0xb8] sm:$0xff] %vm977_vm2, %v3120_v55  ;;  %v1250_v57 = vpop.f32.mrb[7].mxu1  ;;  %1305 = vst.msk [vmem:[#allocation2 + $0x30] sm:$0xff] %vm977_vm2, %v1170_v56 }
 0x23a   : > { %1321 = vst.msk [vmem:[#allocation2 + $0xb0] sm:$0xff] %vm977_vm2, %v1250_v57 }
 0x23b   : > { %v3099_v58 = vpop.f32.mrb[8].mxu0 }
 0x23c   : > { %v3123_v59 = vpop.f32.mrb[8].mxu1  ;;  %1308 = vst.msk [vmem:[#allocation2 + $0x48] sm:$0xff] %vm977_vm2, %v3099_v58  ;;  %v1180_v60 = vpop.f32.mrb[9].mxu0 }
 0x23d   : > { %1324 = vst.msk [vmem:[#allocation2 + $0xc8] sm:$0xff] %vm977_vm2, %v3123_v59  ;;  %v1260_v61 = vpop.f32.mrb[9].mxu1  ;;  %1307 = vst.msk [vmem:[#allocation2 + $0x40] sm:$0xff] %vm977_vm2, %v1180_v60 }
 0x23e   : > { %1323 = vst.msk [vmem:[#allocation2 + $0xc0] sm:$0xff] %vm977_vm2, %v1260_v61 }
 0x23f   : > { %v3102_v62 = vpop.f32.mrb[10].mxu0 }
 0x240   : > { %v3126_v63 = vpop.f32.mrb[10].mxu1  ;;  %1310 = vst.msk [vmem:[#allocation2 + $0x58] sm:$0xff] %vm977_vm2, %v3102_v62  ;;  %v1190_v0 = vpop.f32.mrb[11].mxu0 }
 0x241   : > { %1326 = vst.msk [vmem:[#allocation2 + $0xd8] sm:$0xff] %vm977_vm2, %v3126_v63  ;;  %v1270_v1 = vpop.f32.mrb[11].mxu1  ;;  %1309 = vst.msk [vmem:[#allocation2 + $0x50] sm:$0xff] %vm977_vm2, %v1190_v0 }
 0x242   : > { %1325 = vst.msk [vmem:[#allocation2 + $0xd0] sm:$0xff] %vm977_vm2, %v1270_v1 }
 0x243   : > { %v3105_v2 = vpop.f32.mrb[12].mxu0 }
 0x244   : > { %v3129_v3 = vpop.f32.mrb[12].mxu1  ;;  %1312 = vst.msk [vmem:[#allocation2 + $0x68] sm:$0xff] %vm977_vm2, %v3105_v2  ;;  %v1200_v4 = vpop.f32.mrb[13].mxu0 }
 0x245   : > { %1328 = vst.msk [vmem:[#allocation2 + $0xe8] sm:$0xff] %vm977_vm2, %v3129_v3  ;;  %v1280_v5 = vpop.f32.mrb[13].mxu1  ;;  %1311 = vst.msk [vmem:[#allocation2 + $0x60] sm:$0xff] %vm977_vm2, %v1200_v4 }
 0x246   : > { %1327 = vst.msk [vmem:[#allocation2 + $0xe0] sm:$0xff] %vm977_vm2, %v1280_v5 }
 0x247   : > { %v3108_v6 = vpop.f32.mrb[14].mxu0 }
 0x248   : > { %v3132_v7 = vpop.f32.mrb[14].mxu1  ;;  %1314 = vst.msk [vmem:[#allocation2 + $0x78] sm:$0xff] %vm977_vm2, %v3108_v6  ;;  %v1210_v8 = vpop.f32.mrb[15].mxu0 }
 0x249   : > { %1330 = vst.msk [vmem:[#allocation2 + $0xf8] sm:$0xff] %vm977_vm2, %v3132_v7  ;;  %v1290_v9 = vpop.f32.mrb[15].mxu1  ;;  %1313 = vst.msk [vmem:[#allocation2 + $0x70] sm:$0xff] %vm977_vm2, %v1210_v8 }
 0x24a   : > { %1329 = vst.msk [vmem:[#allocation2 + $0xf0] sm:$0xff] %vm977_vm2, %v1290_v9 }
 0x24b PF: > { %v1379_v10 = vld [vmem:[#allocation2 + $0x80] sm:$0xff]  ;;  %v1380_v11 = vld [vmem:[#allocation2 + $0x88] sm:$0xff]  ;;  %v1381_v15 = vld [vmem:[#allocation2 + $0x90] sm:$0xff]  ;;  %v3488_v17 = vmov 0   ;;  %p2761_p13 = scmp.ne.s32.totalorder %s3470_s28, 0 }
 0x24c   : > { %v1363_v12 = vld [vmem:[#allocation2] sm:$0xff]  ;;  %v3237_v13 = vpack.c.bf16 %v1380_v11, %v1379_v10  ;;  %v1364_v14 = vld [vmem:[#allocation2 + $0x8] sm:$0xff]  ;;  %v1382_v16 = vld [vmem:[#allocation2 + $0x98] sm:$0xff]  ;;  %3379 = vset.pattern.permute.xlu1 %v3488_v17  ;;  %3378 = vset.pattern.permute.xlu0 %v3488_v17  ;;  %vm1674_vm3 = vcmask (!%p2761_p13), 130048   ;;  %vm1924_vm4 = vcmask (!%p2761_p13), 261120   ;;  %vm1973_vm5 = vcmask (!%p2761_p13), 7168  }
 0x24d   : > { %v3239_v18 = vpack.c.bf16 %v1364_v14, %v1363_v12  ;;  %v3241_v19 = vpack.c.bf16 %v1382_v16, %v1381_v15  ;;  %v1365_v20 = vld [vmem:[#allocation2 + $0x10] sm:$0xff]  ;;  %v1366_v21 = vld [vmem:[#allocation2 + $0x18] sm:$0xff]  ;;  %v1383_v22 = vld [vmem:[#allocation2 + $0xa0] sm:$0xff]  ;;  %s4151_s22 = scalar_lea.vmem (!%p2761_p13), [#allocation3], %s3668_s30 }
 0x24e   : > { %3238 = vmatprep.subr.bf16.mxu0 %v3237_v13  ;;  %3295 = vmatprep.subr.bf16.mxu1 %v3237_v13  ;;  %v1384_v23 = vld [vmem:[#allocation2 + $0xa8] sm:$0xff]  ;;  %v3243_v24 = vpack.c.bf16 %v1366_v21, %v1365_v20  ;;  %v1367_v26 = vld [vmem:[#allocation2 + $0x20] sm:$0xff]  ;;  %v1385_v28 = vld [vmem:[#allocation2 + $0xb0] sm:$0xff] }
 0x24f   : > { %3240 = vmatpush3.bf16.msra.mxu0 %v3239_v18  ;;  %3303 = vmatpush3.bf16.msra.mxu1 %v3239_v18  ;;  %v3245_v25 = vpack.c.bf16 %v1384_v23, %v1383_v22  ;;  %v1368_v27 = vld [vmem:[#allocation2 + $0x28] sm:$0xff]  ;;  %v1386_v29 = vld [vmem:[#allocation2 + $0xb8] sm:$0xff]  ;;  %v1369_v32 = vld [vmem:[#allocation2 + $0x30] sm:$0xff] }
 0x250   : > { %3242 = vmatprep.subr.bf16.mxu0 %v3241_v19  ;;  %3296 = vmatprep.subr.bf16.mxu1 %v3241_v19  ;;  %v3247_v30 = vpack.c.bf16 %v1368_v27, %v1367_v26  ;;  %v3249_v31 = vpack.c.bf16 %v1386_v29, %v1385_v28  ;;  %v1370_v33 = vld [vmem:[#allocation2 + $0x38] sm:$0xff]  ;;  %v1387_v34 = vld [vmem:[#allocation2 + $0xc0] sm:$0xff]  ;;  %v1388_v35 = vld [vmem:[#allocation2 + $0xc8] sm:$0xff] }
 0x251   : > { %v1332_v36 = vld [vmem:[%s3677_s18 + $0x8] sm:$0xff]  ;;  %v3251_v38 = vpack.c.bf16 %v1370_v33, %v1369_v32  ;;  %v3253_v39 = vpack.c.bf16 %v1388_v35, %v1387_v34  ;;  %v1371_v40 = vld [vmem:[#allocation2 + $0x40] sm:$0xff]  ;;  %v1389_v42 = vld [vmem:[#allocation2 + $0xd0] sm:$0xff] }
 0x252   : > { %1459 = vmatprep.mubr.f32.mxu0 %v1332_v36  ;;  %v1348_v37 = vld [vmem:[%s3677_s18 + $0x88] sm:$0xff]  ;;  %v1390_v43 = vld [vmem:[#allocation2 + $0xd8] sm:$0xff]  ;;  %v1373_v46 = vld [vmem:[#allocation2 + $0x50] sm:$0xff] }
 0x253   : > { %3244 = vmatpush3.bf16.msra.mxu0 %v3243_v24  ;;  %3304 = vmatpush3.bf16.msra.mxu1 %v3243_v24  ;;  %v1372_v41 = vld [vmem:[#allocation2 + $0x48] sm:$0xff]  ;;  %v3257_v45 = vpack.c.bf16 %v1390_v43, %v1389_v42  ;;  %v1374_v47 = vld [vmem:[#allocation2 + $0x58] sm:$0xff]  ;;  %v1391_v48 = vld [vmem:[#allocation2 + $0xe0] sm:$0xff] }
 0x254   : > { %3246 = vmatprep.subr.bf16.mxu0 %v3245_v25  ;;  %3297 = vmatprep.subr.bf16.mxu1 %v3245_v25  ;;  %v3255_v44 = vpack.c.bf16 %v1372_v41, %v1371_v40  ;;  %v1392_v49 = vld [vmem:[#allocation2 + $0xe8] sm:$0xff]  ;;  %v3259_v50 = vpack.c.bf16 %v1374_v47, %v1373_v46  ;;  %v1375_v51 = vld [vmem:[#allocation2 + $0x60] sm:$0xff]  ;;  %v1542_v54 = vld [vmem:[%s3682_s25 + $0x10] sm:$0xff] }
 0x255   : > { %1499 = vmatprep.mubr.f32.mxu1 %v1348_v37  ;;  %v3261_v52 = vpack.c.bf16 %v1392_v49, %v1391_v48  ;;  %v1376_v53 = vld [vmem:[#allocation2 + $0x68] sm:$0xff]  ;;  %v1540_v55 = vld [vmem:[%s3682_s25] sm:$0xff]  ;;  %v1393_v56 = vld [vmem:[#allocation2 + $0xf0] sm:$0xff]  ;;  %1568 = vperm.xlu1 %3379, %v1542_v54  }
 0x256   : > { %v1394_v57 = vld [vmem:[#allocation2 + $0xf8] sm:$0xff]  ;;  %1558 = vperm.xlu0 %3378, %v1540_v55   ;;  %v1541_v59 = vld [vmem:[%s3682_s25 + $0x8] sm:$0xff]  ;;  %v3263_v60 = vpack.c.bf16 %v1376_v53, %v1375_v51  ;;  %v1377_v62 = vld [vmem:[#allocation2 + $0x70] sm:$0xff] }
 0x257   : > { %3248 = vmatpush3.bf16.msra.mxu0 %v3247_v30  ;;  %3305 = vmatpush3.bf16.msra.mxu1 %v3247_v30  ;;  %v1543_v58 = vld [vmem:[%s3682_s25 + $0x18] sm:$0xff]  ;;  %v3265_v61 = vpack.c.bf16 %v1394_v57, %v1393_v56  ;;  %v1545_v0 = vld [vmem:[%s3682_s25 + $0x28] sm:$0xff]  ;;  %v1544_v1 = vld [vmem:[%s3682_s25 + $0x20] sm:$0xff] }
 0x258   : > { %3250 = vmatprep.subr.bf16.mxu0 %v3249_v31  ;;  %3298 = vmatprep.subr.bf16.mxu1 %v3249_v31  ;;  %v1378_v63 = vld [vmem:[#allocation2 + $0x78] sm:$0xff]  ;;  %v1546_v4 = vld [vmem:[%s3682_s25 + $0x30] sm:$0xff]  ;;  %v1331_v5 = vld [vmem:[%s3677_s18] sm:$0xff] }
 0x259   : > { %1573 = vperm.xlu1 %3379, %v1543_v58   ;;  %v3267_v2 = vpack.c.bf16 %v1378_v63, %v1377_v62  ;;  %v1547_v3 = vld [vmem:[%s3682_s25 + $0x38] sm:$0xff]  ;;  %v1347_v6 = vld [vmem:[%s3677_s18 + $0x80] sm:$0xff]  ;;  %v1549_v9 = vld [vmem:[%s3682_s25 + $0x48] sm:$0xff] }
 0x25a   : > { %1563 = vperm.xlu0 %3378, %v1541_v59   ;;  %v1334_v7 = vld [vmem:[%s3677_s18 + $0x18] sm:$0xff]  ;;  %v1548_v10 = vld [vmem:[%s3682_s25 + $0x40] sm:$0xff]  ;;  %v1333_v11 = vld [vmem:[%s3677_s18 + $0x10] sm:$0xff] }
 0x25b   : > { %3252 = vmatpush3.bf16.msra.mxu0 %v3251_v38  ;;  %3306 = vmatpush3.bf16.msra.mxu1 %v3251_v38  ;;  %v1350_v8 = vld [vmem:[%s3677_s18 + $0x98] sm:$0xff]  ;;  %v1349_v12 = vld [vmem:[%s3677_s18 + $0x90] sm:$0xff]  ;;  %v1336_v13 = vld [vmem:[%s3677_s18 + $0x28] sm:$0xff] }
 0x25c   : > { %3254 = vmatprep.subr.bf16.mxu0 %v3253_v39  ;;  %3299 = vmatprep.subr.bf16.mxu1 %v3253_v39  ;;  %v1352_v14 = vld [vmem:[%s3677_s18 + $0xa8] sm:$0xff]  ;;  %v1551_v15 = vld [vmem:[%s3682_s25 + $0x58] sm:$0xff]  ;;  %v1550_v16 = vld [vmem:[%s3682_s25 + $0x50] sm:$0xff] }
 0x25d   : > { %1583 = vperm.xlu1 %3379, %v1545_v0   ;;  %v1335_v17 = vld [vmem:[%s3677_s18 + $0x20] sm:$0xff]  ;;  %v1338_v19 = vld [vmem:[%s3677_s18 + $0x38] sm:$0xff]  ;;  %v1553_v21 = vld [vmem:[%s3682_s25 + $0x68] sm:$0xff] }
 0x25e   : > { %1578 = vperm.xlu0 %3378, %v1544_v1   ;;  %v1351_v18 = vld [vmem:[%s3677_s18 + $0xa0] sm:$0xff]  ;;  %v1354_v20 = vld [vmem:[%s3677_s18 + $0xb8] sm:$0xff]  ;;  %v1337_v23 = vld [vmem:[%s3677_s18 + $0x30] sm:$0xff] }
 0x25f   : > { %3256 = vmatpush3.bf16.msra.mxu0 %v3255_v44  ;;  %3307 = vmatpush3.bf16.msra.mxu1 %v3255_v44  ;;  %v1552_v22 = vld [vmem:[%s3682_s25 + $0x60] sm:$0xff]  ;;  %v1353_v24 = vld [vmem:[%s3677_s18 + $0xb0] sm:$0xff]  ;;  %v1340_v25 = vld [vmem:[%s3677_s18 + $0x48] sm:$0xff] }
 0x260   : > { %3258 = vmatprep.subr.bf16.mxu0 %v3257_v45  ;;  %3300 = vmatprep.subr.bf16.mxu1 %v3257_v45  ;;  %v1356_v26 = vld [vmem:[%s3677_s18 + $0xc8] sm:$0xff]  ;;  %v1555_v27 = vld [vmem:[%s3682_s25 + $0x78] sm:$0xff]  ;;  %v1554_v28 = vld [vmem:[%s3682_s25 + $0x70] sm:$0xff]  ;;  %s4035_s25 = scalar_lea.vmem (!%p2761_p13), %s4450_s1, %s3668_s30 }
 0x261   : > { %1593 = vperm.xlu1 %3379, %v1547_v3   ;;  %v1339_v29 = vld [vmem:[%s3677_s18 + $0x40] sm:$0xff]  ;;  %v1342_v31 = vld [vmem:[%s3677_s18 + $0x58] sm:$0xff]  ;;  %v1341_v33 = vld [vmem:[%s3677_s18 + $0x50] sm:$0xff] }
 0x262   : > { %1588 = vperm.xlu0 %3378, %v1546_v4   ;;  %v1355_v30 = vld [vmem:[%s3677_s18 + $0xc0] sm:$0xff]  ;;  %v1358_v32 = vld [vmem:[%s3677_s18 + $0xd8] sm:$0xff]  ;;  %v1357_v34 = vld [vmem:[%s3677_s18 + $0xd0] sm:$0xff] }
 0x263   : > { %3260 = vmatpush3.bf16.msra.mxu0 %v3259_v50  ;;  %3308 = vmatpush3.bf16.msra.mxu1 %v3259_v50  ;;  %v1344_v35 = vld [vmem:[%s3677_s18 + $0x68] sm:$0xff]  ;;  %v1343_v37 = vld [vmem:[%s3677_s18 + $0x60] sm:$0xff]  ;;  %v1346_v39 = vld [vmem:[%s3677_s18 + $0x78] sm:$0xff] }
 0x264   : > { %3262 = vmatprep.subr.bf16.mxu0 %v3261_v52  ;;  %3301 = vmatprep.subr.bf16.mxu1 %v3261_v52  ;;  %v1360_v36 = vld [vmem:[%s3677_s18 + $0xe8] sm:$0xff]  ;;  %v1359_v38 = vld [vmem:[%s3677_s18 + $0xe0] sm:$0xff]  ;;  %v1362_v40 = vld [vmem:[%s3677_s18 + $0xf8] sm:$0xff] }
 0x265   : > { %1603 = vperm.xlu1 %3379, %v1549_v9   ;;  %v1345_v41 = vld [vmem:[%s3677_s18 + $0x70] sm:$0xff] }
 0x266   : > { %1598 = vperm.xlu0 %3378, %v1548_v10   ;;  %v1361_v42 = vld [vmem:[%s3677_s18 + $0xf0] sm:$0xff] }
 0x267   : > { %3264 = vmatpush3.bf16.msra.mxu0 %v3263_v60  ;;  %3309 = vmatpush3.bf16.msra.mxu1 %v3263_v60 }
 0x268   : > { %3266 = vmatprep.subr.bf16.mxu0 %v3265_v61  ;;  %3302 = vmatprep.subr.bf16.mxu1 %v3265_v61 }
 0x269   : > { %1613 = vperm.xlu1 %3379, %v1551_v15  }
 0x26a   : > { %1608 = vperm.xlu0 %3378, %v1550_v16  }
 0x26b   : > { %3268 = vmatpush3.bf16.msra.mxu0 %v3267_v2  ;;  %3310 = vmatpush3.bf16.msra.mxu1 %v3267_v2 }
 0x26d   : > { %1623 = vperm.xlu1 %3379, %v1553_v21  }
 0x26e   : > { %1460 = vmatmul.mubr.f32.vlgmr.msra.gmra.mrb[0].mxu0 %v1331_v5  ;;  %1500 = vmatmul.mubr.f32.vlgmr.msra.gmra.mrb[0].mxu1 %v1347_v6 }
 0x26f   : > { %1464 = vmatprep.mubr.f32.mxu0 %v1334_v7  ;;  %1504 = vmatprep.mubr.f32.mxu1 %v1350_v8 }
 0x270   : > { %1618 = vperm.xlu0 %3378, %v1552_v22  }
 0x271   : > { %1633 = vperm.xlu1 %3379, %v1555_v27  }
 0x272   : > { %1465 = vmatmul.mubr.f32.gmra.mrb[2].mxu0 %v1333_v11  ;;  %1505 = vmatmul.mubr.f32.gmra.mrb[2].mxu1 %v1349_v12 }
 0x273   : > { %1469 = vmatprep.mubr.f32.mxu0 %v1336_v13  ;;  %1509 = vmatprep.mubr.f32.mxu1 %v1352_v14 }
 0x274   : > { %1628 = vperm.xlu0 %3378, %v1554_v28  }
 0x276   : > { %1470 = vmatmul.mubr.f32.gmra.mrb[4].mxu0 %v1335_v17  ;;  %1510 = vmatmul.mubr.f32.gmra.mrb[4].mxu1 %v1351_v18 }
 0x277   : > { %1474 = vmatprep.mubr.f32.mxu0 %v1338_v19  ;;  %1514 = vmatprep.mubr.f32.mxu1 %v1354_v20 }
 0x27a   : > { %1475 = vmatmul.mubr.f32.gmra.mrb[6].mxu0 %v1337_v23  ;;  %1515 = vmatmul.mubr.f32.gmra.mrb[6].mxu1 %v1353_v24 }
 0x27b   : > { %1479 = vmatprep.mubr.f32.mxu0 %v1340_v25  ;;  %1519 = vmatprep.mubr.f32.mxu1 %v1356_v26 }
 0x27e   : > { %1480 = vmatmul.mubr.f32.gmra.mrb[8].mxu0 %v1339_v29  ;;  %1520 = vmatmul.mubr.f32.gmra.mrb[8].mxu1 %v1355_v30 }
 0x27f   : > { %1484 = vmatprep.mubr.f32.mxu0 %v1342_v31  ;;  %1524 = vmatprep.mubr.f32.mxu1 %v1358_v32 }
 0x282   : > { %1485 = vmatmul.mubr.f32.gmra.mrb[10].mxu0 %v1341_v33  ;;  %1525 = vmatmul.mubr.f32.gmra.mrb[10].mxu1 %v1357_v34 }
 0x283   : > { %1489 = vmatprep.mubr.f32.mxu0 %v1344_v35  ;;  %1529 = vmatprep.mubr.f32.mxu1 %v1360_v36 }
 0x286   : > { %1490 = vmatmul.mubr.f32.gmra.mrb[12].mxu0 %v1343_v37  ;;  %1530 = vmatmul.mubr.f32.gmra.mrb[12].mxu1 %v1359_v38 }
 0x287   : > { %1494 = vmatprep.mubr.f32.mxu0 %v1346_v39  ;;  %1534 = vmatprep.mubr.f32.mxu1 %v1362_v40 }
 0x28a   : > { %1495 = vmatmul.mubr.f32.gmra.mrb[14].mxu0 %v1345_v41  ;;  %1535 = vmatmul.mubr.f32.gmra.mrb[14].mxu1 %v1361_v42 }
 0x2d4   : > { %v1569_v44 = vpop.permute.xlu1 %1568 }
 0x2d5   : > { %v1559_v43 = vpop.permute.xlu0 %1558 }
 0x2d8   : > { %v1574_v46 = vpop.permute.xlu1 %1573 }
 0x2d9   : > { %v1564_v45 = vpop.permute.xlu0 %1563 }
 0x2dc   : > { %v1584_v48 = vpop.permute.xlu1 %1583 }
 0x2dd   : > { %v1579_v47 = vpop.permute.xlu0 %1578 }
 0x2e0   : > { %v3994_v50 = vpop.permute.xlu1 %1593 }
 0x2e1   : > { %v3992_v49 = vpop.permute.xlu0 %1588 }
 0x2e4   : > { %v1604_v2 = vpop.permute.xlu1 %1603 }
 0x2e5   : > { %v1599_v57 = vpop.permute.xlu0 %1598 }
 0x2e8   : > { %v1614_v20 = vpop.permute.xlu1 %1613 }
 0x2e9   : > { %v1609_v11 = vpop.permute.xlu0 %1608 }
 0x2ec   : > { %v1624_v38 = vpop.permute.xlu1 %1623 }
 0x2ef   : > { %v1619_v29 = vpop.permute.xlu0 %1618 }
 0x341   : > { %v2919_v51 = vpop.f32.mrb[0].mxu0  ;;  %v2943_v52 = vpop.f32.mrb[0].mxu1 }
 0x342   : > { %v2920_v53 = vpop.f32.mrb[1].mxu0  ;;  %v2944_v54 = vpop.f32.mrb[1].mxu1 }
 0x343   : > { %v2921_v55 = vadd.f32 %v2920_v53, %v2919_v51  ;;  %v2945_v56 = vadd.f32 %v2944_v54, %v2943_v52 }
 0x345   : > { %v3996_v58 = vmul.f32 %v2921_v55, %v1559_v43  ;;  %v3998_v59 = vmul.f32 %v2945_v56, %v1599_v57  ;;  %v2922_v60 = vpop.f32.mrb[2].mxu0  ;;  %v2946_v61 = vpop.f32.mrb[2].mxu1 }
 0x346   : > { %v2923_v62 = vpop.f32.mrb[3].mxu0  ;;  %v2947_v63 = vpop.f32.mrb[3].mxu1 }
 0x347   : > { %v2924_v0 = vadd.f32 %v2923_v62, %v2922_v60  ;;  %v2948_v1 = vadd.f32 %v2947_v63, %v2946_v61  ;;  %v1634_v60 = vpop.permute.xlu1 %1633  ;;  %v1672_v63 = vld [vmem:[#allocation5] sm:$0xff] (!%p2761_p13) }
 0x349   : > { %v4000_v3 = vmul.f32 %v2924_v0, %v1564_v45  ;;  %v4002_v4 = vmul.f32 %v2948_v1, %v1604_v2  ;;  %v2925_v5 = vpop.f32.mrb[4].mxu0  ;;  %v2949_v6 = vpop.f32.mrb[4].mxu1  ;;  %v1656_v0 = vld [vmem:[%s4035_s25] sm:$0xff] (!%p2761_p13)  ;;  %v1657_v2 = vld [vmem:[%s4035_s25 + $0x8] sm:$0xff] (!%p2761_p13) }
 0x34a   : > { %v2926_v7 = vpop.f32.mrb[5].mxu0  ;;  %v2950_v8 = vpop.f32.mrb[5].mxu1  ;;  %v1664_v1 = vld [vmem:[%s4035_s25 + $0x40] sm:$0xff] (!%p2761_p13)  ;;  %3137 = vmatprep.mubr.msk.f32.mxu0 (!%p2761_p13), %vm1674_vm3, %v1656_v0 }
 0x34b   : > { %v2927_v9 = vadd.f32 %v2926_v7, %v2925_v5  ;;  %v2951_v10 = vadd.f32 %v2950_v8, %v2949_v6  ;;  %3149 = vmatprep.mubr.msk.f32.mxu1 (!%p2761_p13), %vm1674_vm3, %v1664_v1  ;;  %v1665_v5 = vld [vmem:[%s4035_s25 + $0x48] sm:$0xff] (!%p2761_p13)  ;;  %v1658_v6 = vld [vmem:[%s4035_s25 + $0x10] sm:$0xff] (!%p2761_p13)  ;;  %v1659_v8 = vld [vmem:[%s4035_s25 + $0x18] sm:$0xff] (!%p2761_p13) }
 0x34c   : > { %v1666_v7 = vld [vmem:[%s4035_s25 + $0x50] sm:$0xff] (!%p2761_p13) }
 0x34d   : > { %v4004_v12 = vmul.f32 %v2927_v9, %v1569_v44  ;;  %v4006_v13 = vmul.f32 %v2951_v10, %v1609_v11  ;;  %v2928_v14 = vpop.f32.mrb[6].mxu0  ;;  %v2952_v15 = vpop.f32.mrb[6].mxu1  ;;  %v1667_v9 = vld [vmem:[%s4035_s25 + $0x58] sm:$0xff] (!%p2761_p13)  ;;  %v1660_v10 = vld [vmem:[%s4035_s25 + $0x20] sm:$0xff] (!%p2761_p13) }
 0x34e   : > { %v2929_v16 = vpop.f32.mrb[7].mxu0  ;;  %v2953_v17 = vpop.f32.mrb[7].mxu1  ;;  %v1668_v11 = vld [vmem:[%s4035_s25 + $0x60] sm:$0xff] (!%p2761_p13) }
 0x34f   : > { %v2930_v18 = vadd.f32 %v2929_v16, %v2928_v14  ;;  %v2954_v19 = vadd.f32 %v2953_v17, %v2952_v15  ;;  %v1661_v14 = vld [vmem:[%s4035_s25 + $0x28] sm:$0xff] (!%p2761_p13)  ;;  %v1662_v16 = vld [vmem:[%s4035_s25 + $0x30] sm:$0xff] (!%p2761_p13) }
 0x350   : > { %v1669_v15 = vld [vmem:[%s4035_s25 + $0x68] sm:$0xff] (!%p2761_p13)  ;;  %v1670_v17 = vld [vmem:[%s4035_s25 + $0x70] sm:$0xff] (!%p2761_p13) }
 0x351   : > { %v4008_v21 = vmul.f32 %v2930_v18, %v1574_v46  ;;  %v4010_v22 = vmul.f32 %v2954_v19, %v1614_v20  ;;  %v2931_v23 = vpop.f32.mrb[8].mxu0  ;;  %v2955_v24 = vpop.f32.mrb[8].mxu1  ;;  %v1663_v18 = vld [vmem:[%s4035_s25 + $0x38] sm:$0xff] (!%p2761_p13)  ;;  %v3489_v20 = vmov (!%p2761_p13), 0.0  }
 0x352   : > { %v2932_v25 = vpop.f32.mrb[9].mxu0  ;;  %v2956_v26 = vpop.f32.mrb[9].mxu1  ;;  %v1671_v19 = vld [vmem:[%s4035_s25 + $0x78] sm:$0xff] (!%p2761_p13)  ;;  %1957 = vst.msk [vmem:[%s3692_s29] sm:$0xff] (!%p2761_p13), %vm1924_vm4, %v3489_v20  ;;  %1958 = vst.msk [vmem:[%s3692_s29 + $0x8] sm:$0xff] (!%p2761_p13), %vm1924_vm4, %v3489_v20 }
 0x353   : > { %v2933_v27 = vadd.f32 %v2932_v25, %v2931_v23  ;;  %v2957_v28 = vadd.f32 %v2956_v26, %v2955_v24  ;;  %1959 = vst.msk [vmem:[%s3692_s29 + $0x10] sm:$0xff] (!%p2761_p13), %vm1924_vm4, %v3489_v20  ;;  %1960 = vst.msk [vmem:[%s3692_s29 + $0x18] sm:$0xff] (!%p2761_p13), %vm1924_vm4, %v3489_v20  ;;  %v4136_v24 = vld [vmem:[%s4454_s5] ss:$0 sm:$0xff] (!%p2761_p13) }
 0x354   : > { %1961 = vst.msk [vmem:[%s3692_s29 + $0x20] sm:$0xff] (!%p2761_p13), %vm1924_vm4, %v3489_v20  ;;  %1962 = vst.msk [vmem:[%s3692_s29 + $0x28] sm:$0xff] (!%p2761_p13), %vm1924_vm4, %v3489_v20 }
 0x355   : > { %v4012_v30 = vmul.f32 %v2933_v27, %v1579_v47  ;;  %v4014_v31 = vmul.f32 %v2957_v28, %v1619_v29  ;;  %v2934_v32 = vpop.f32.mrb[10].mxu0  ;;  %v2958_v33 = vpop.f32.mrb[10].mxu1  ;;  %1963 = vst.msk [vmem:[%s3692_s29 + $0x30] sm:$0xff] (!%p2761_p13), %vm1924_vm4, %v3489_v20  ;;  %1964 = vst.msk [vmem:[%s3692_s29 + $0x38] sm:$0xff] (!%p2761_p13), %vm1924_vm4, %v3489_v20 }
 0x356   : > { %v2935_v34 = vpop.f32.mrb[11].mxu0  ;;  %v2959_v35 = vpop.f32.mrb[11].mxu1  ;;  %1965 = vst.msk [vmem:[%s3692_s29 + $0x40] sm:$0xff] (!%p2761_p13), %vm1924_vm4, %v3489_v20  ;;  %1966 = vst.msk [vmem:[%s3692_s29 + $0x48] sm:$0xff] (!%p2761_p13), %vm1924_vm4, %v3489_v20 }
 0x357   : > { %v2936_v36 = vadd.f32 %v2935_v34, %v2934_v32  ;;  %v2960_v37 = vadd.f32 %v2959_v35, %v2958_v33  ;;  %v1629_v47 = vpop.permute.xlu0 %1628  ;;  %1967 = vst.msk [vmem:[%s3692_s29 + $0x50] sm:$0xff] (!%p2761_p13), %vm1924_vm4, %v3489_v20  ;;  %1968 = vst.msk [vmem:[%s3692_s29 + $0x58] sm:$0xff] (!%p2761_p13), %vm1924_vm4, %v3489_v20 }
 0x358   : > { %1969 = vst.msk [vmem:[%s3692_s29 + $0x60] sm:$0xff] (!%p2761_p13), %vm1924_vm4, %v3489_v20  ;;  %1970 = vst.msk [vmem:[%s3692_s29 + $0x68] sm:$0xff] (!%p2761_p13), %vm1924_vm4, %v3489_v20 }
 0x359   : > { %v4016_v39 = vmul.f32 %v2936_v36, %v1584_v48  ;;  %v4018_v40 = vmul.f32 %v2960_v37, %v1624_v38  ;;  %v2937_v41 = vpop.f32.mrb[12].mxu0  ;;  %v2961_v42 = vpop.f32.mrb[12].mxu1  ;;  %1971 = vst.msk [vmem:[%s3692_s29 + $0x70] sm:$0xff] (!%p2761_p13), %vm1924_vm4, %v3489_v20  ;;  %1972 = vst.msk [vmem:[%s3692_s29 + $0x78] sm:$0xff] (!%p2761_p13), %vm1924_vm4, %v3489_v20 }
 0x35a   : > { %v2938_v43 = vpop.f32.mrb[13].mxu0  ;;  %v2962_v44 = vpop.f32.mrb[13].mxu1  ;;  %1974 = vst.msk [vmem:[%s3697_s14] sm:$0xff] (!%p2761_p13), %vm1973_vm5, %v3489_v20  ;;  %1975 = vst.msk [vmem:[%s3697_s14 + $0x8] sm:$0xff] (!%p2761_p13), %vm1973_vm5, %v3489_v20 }
 0x35b   : > { %v2939_v45 = vadd.f32 %v2938_v43, %v2937_v41  ;;  %v2963_v46 = vadd.f32 %v2962_v44, %v2961_v42  ;;  %1654 = sbr.rel (%p2761_p13) target bundleno = 1105 (0x451), region = 84  ;;  %1976 = vst.msk [vmem:[%s3697_s14 + $0x10] sm:$0xff] (!%p2761_p13), %vm1973_vm5, %v3489_v20  ;;  %1977 = vst.msk [vmem:[%s3697_s14 + $0x18] sm:$0xff] (!%p2761_p13), %vm1973_vm5, %v3489_v20 }
 0x35c   : > { %1978 = vst.msk [vmem:[%s3697_s14 + $0x20] sm:$0xff] (!%p2761_p13), %vm1973_vm5, %v3489_v20  ;;  %1979 = vst.msk [vmem:[%s3697_s14 + $0x28] sm:$0xff] (!%p2761_p13), %vm1973_vm5, %v3489_v20 }
 0x35d   : > { %v4021_v51 = vmul.f32 %v2939_v45, %v3992_v49  ;;  %v4023_v52 = vmul.f32 %v2963_v46, %v1629_v47  ;;  %v2940_v53 = vpop.f32.mrb[14].mxu0  ;;  %v2964_v54 = vpop.f32.mrb[14].mxu1  ;;  %v1673_v49 = vld [vmem:[#allocation5 + $0x8] sm:$0xff] (!%p2761_p13)  ;;  %1980 = vst.msk [vmem:[%s3697_s14 + $0x30] sm:$0xff] (!%p2761_p13), %vm1973_vm5, %v3489_v20  ;;  %1981 = vst.msk [vmem:[%s3697_s14 + $0x38] sm:$0xff] (!%p2761_p13), %vm1973_vm5, %v3489_v20 }
 0x35e   : > { %v2941_v55 = vpop.f32.mrb[15].mxu0  ;;  %v2965_v56 = vpop.f32.mrb[15].mxu1  ;;  %1982 = vst.msk [vmem:[%s3697_s14 + $0x40] sm:$0xff] (!%p2761_p13), %vm1973_vm5, %v3489_v20  ;;  %1983 = vst.msk [vmem:[%s3697_s14 + $0x48] sm:$0xff] (!%p2761_p13), %vm1973_vm5, %v3489_v20 }
 0x35f   : > { %v2942_v48 = vadd.f32 %v2941_v55, %v2940_v53  ;;  %v2966_v57 = vadd.f32 %v2965_v56, %v2964_v54  ;;  %1984 = vst.msk [vmem:[%s3697_s14 + $0x50] sm:$0xff] (!%p2761_p13), %vm1973_vm5, %v3489_v20  ;;  %1985 = vst.msk [vmem:[%s3697_s14 + $0x58] sm:$0xff] (!%p2761_p13), %vm1973_vm5, %v3489_v20 }
 0x360   : > { %1986 = vst.msk [vmem:[%s3697_s14 + $0x60] sm:$0xff] (!%p2761_p13), %vm1973_vm5, %v3489_v20  ;;  %1987 = vst.msk [vmem:[%s3697_s14 + $0x68] sm:$0xff] (!%p2761_p13), %vm1973_vm5, %v3489_v20 }
 0x361   : > { %v4026_v61 = vmul.f32 %v2942_v48, %v3994_v50  ;;  %v4028_v62 = vmul.f32 %v2966_v57, %v1634_v60  ;;  %v3269_v50 = vpack.c.bf16 (!%p2761_p13), %v1673_v49, %v1672_v63  ;;  %1988 = vst.msk [vmem:[%s3697_s14 + $0x70] sm:$0xff] (!%p2761_p13), %vm1973_vm5, %v3489_v20  ;;  %1989 = vst.msk [vmem:[%s3697_s14 + $0x78] sm:$0xff] (!%p2761_p13), %vm1973_vm5, %v3489_v20 }
 0x363   : > { %3270 = vmatprep.subr.bf16.mxu0 %v3269_v50  ;;  %3311 = vmatprep.subr.bf16.mxu1 %v3269_v50 }
 0x364   : > { %3272 = vmatpush3.bf16.msra.mxu0 %v3269_v50  ;;  %3312 = vmatpush3.bf16.msra.mxu1 %v3269_v50 }
 0x367   : > { %3138 = vmatmul.mubr.msk.f32.vlgmr.msra.gmra.mrb[0].mxu0 %vm1674_vm3, %v1657_v2  ;;  %3150 = vmatmul.mubr.msk.f32.vlgmr.msra.gmra.mrb[0].mxu1 %vm1674_vm3, %v1665_v5 }
 0x368   : > { %3140 = vmatprep.mubr.msk.f32.mxu0 %vm1674_vm3, %v1658_v6  ;;  %3152 = vmatprep.mubr.msk.f32.mxu1 %vm1674_vm3, %v1666_v7 }
 0x36b   : > { %3141 = vmatmul.mubr.msk.f32.gmra.mrb[2].mxu0 %vm1674_vm3, %v1659_v8  ;;  %3153 = vmatmul.mubr.msk.f32.gmra.mrb[2].mxu1 %vm1674_vm3, %v1667_v9 }
 0x36c   : > { %3143 = vmatprep.mubr.msk.f32.mxu0 %vm1674_vm3, %v1660_v10  ;;  %3155 = vmatprep.mubr.msk.f32.mxu1 %vm1674_vm3, %v1668_v11 }
 0x36f   : > { %3144 = vmatmul.mubr.msk.f32.gmra.mrb[4].mxu0 %vm1674_vm3, %v1661_v14  ;;  %3156 = vmatmul.mubr.msk.f32.gmra.mrb[4].mxu1 %vm1674_vm3, %v1669_v15 }
 0x370   : > { %3146 = vmatprep.mubr.msk.f32.mxu0 %vm1674_vm3, %v1662_v16  ;;  %3158 = vmatprep.mubr.msk.f32.mxu1 %vm1674_vm3, %v1670_v17 }
 0x373   : > { %3147 = vmatmul.mubr.msk.f32.gmra.mrb[6].mxu0 %vm1674_vm3, %v1663_v18  ;;  %3159 = vmatmul.mubr.msk.f32.gmra.mrb[6].mxu1 %vm1674_vm3, %v1671_v19 }
 0x43a   : > { %v3139_v23 = vpop.f32.mrb[0].mxu0  ;;  %v3151_v25 = vpop.f32.mrb[0].mxu1 }
 0x43b   : > { %v1869_v26 = vadd.f32 %v3139_v23, %v4000_v3  ;;  %v1877_v27 = vadd.f32 %v3151_v25, %v4002_v4  ;;  %v1789_v28 = vpop.f32.mrb[1].mxu0  ;;  %v1829_v29 = vpop.f32.mrb[1].mxu1 }
 0x43c   : > { %v1868_v32 = vadd.f32 %v1789_v28, %v3996_v58  ;;  %v1876_v33 = vadd.f32 %v1829_v29, %v3998_v59 }
 0x43d   : > { %v1892_v34 = vadd.f32 %v4136_v24, %v1869_v26  ;;  %v1900_v35 = vadd.f32 %v4136_v24, %v1877_v27 }
 0x43e   : > { %v1891_v36 = vadd.f32 %v4136_v24, %v1868_v32  ;;  %v1899_v37 = vadd.f32 %v4136_v24, %v1876_v33  ;;  %v3142_v38 = vpop.f32.mrb[2].mxu0  ;;  %v3154_v41 = vpop.f32.mrb[2].mxu1 }
 0x43f   : > { %v1908_v42 = vmax.f32 %v1892_v34, 0.0  ;;  %v1916_v43 = vmax.f32 %v1900_v35, 0.0  ;;  %v1871_v44 = vadd.f32 %v3142_v38, %v4008_v21  ;;  %v1879_v45 = vadd.f32 %v3154_v41, %v4010_v22  ;;  %v1799_v46 = vpop.f32.mrb[3].mxu0  ;;  %v1839_v47 = vpop.f32.mrb[3].mxu1 }
 0x440   : > { %v1907_v53 = vmax.f32 %v1891_v36, 0.0  ;;  %v1915_v54 = vmax.f32 %v1899_v37, 0.0  ;;  %v1870_v55 = vadd.f32 %v1799_v46, %v4004_v12  ;;  %v1878_v56 = vadd.f32 %v1839_v47, %v4006_v13 }
 0x441   : > { %1926 = vst.msk [vmem:[%s4151_s22 + $0x8] sm:$0xff] %vm1924_vm4, %v1908_v42  ;;  %1942 = vst.msk [vmem:[%s3687_s19 + $0x8] sm:$0xff] %vm1924_vm4, %v1908_v42  ;;  %v1894_v48 = vadd.f32 %v4136_v24, %v1871_v44  ;;  %v1902_v57 = vadd.f32 %v4136_v24, %v1879_v45 }
 0x442   : > { %1934 = vst.msk [vmem:[%s4151_s22 + $0x48] sm:$0xff] %vm1924_vm4, %v1916_v43  ;;  %1950 = vst.msk [vmem:[%s3687_s19 + $0x48] sm:$0xff] %vm1924_vm4, %v1916_v43  ;;  %v1893_v60 = vadd.f32 %v4136_v24, %v1870_v55  ;;  %v1901_v63 = vadd.f32 %v4136_v24, %v1878_v56  ;;  %v3145_v49 = vpop.f32.mrb[4].mxu0  ;;  %v3157_v50 = vpop.f32.mrb[4].mxu1 }
 0x443   : > { %1925 = vst.msk [vmem:[%s4151_s22] sm:$0xff] %vm1924_vm4, %v1907_v53  ;;  %1941 = vst.msk [vmem:[%s3687_s19] sm:$0xff] %vm1924_vm4, %v1907_v53  ;;  %v1910_v0 = vmax.f32 %v1894_v48, 0.0  ;;  %v1918_v1 = vmax.f32 %v1902_v57, 0.0  ;;  %v1873_v2 = vadd.f32 %v3145_v49, %v4016_v39  ;;  %v1881_v5 = vadd.f32 %v3157_v50, %v4018_v40  ;;  %v1809_v6 = vpop.f32.mrb[5].mxu0  ;;  %v1849_v7 = vpop.f32.mrb[5].mxu1 }
 0x444   : > { %1933 = vst.msk [vmem:[%s4151_s22 + $0x40] sm:$0xff] %vm1924_vm4, %v1915_v54  ;;  %1949 = vst.msk [vmem:[%s3687_s19 + $0x40] sm:$0xff] %vm1924_vm4, %v1915_v54  ;;  %v1909_v8 = vmax.f32 %v1893_v60, 0.0  ;;  %v1917_v9 = vmax.f32 %v1901_v63, 0.0  ;;  %v1872_v10 = vadd.f32 %v1809_v6, %v4012_v30  ;;  %v1880_v11 = vadd.f32 %v1849_v7, %v4014_v31 }
 0x445   : > { %1928 = vst.msk [vmem:[%s4151_s22 + $0x18] sm:$0xff] %vm1924_vm4, %v1910_v0  ;;  %1944 = vst.msk [vmem:[%s3687_s19 + $0x18] sm:$0xff] %vm1924_vm4, %v1910_v0  ;;  %v1896_v14 = vadd.f32 %v4136_v24, %v1873_v2  ;;  %v1904_v15 = vadd.f32 %v4136_v24, %v1881_v5 }
 0x446   : > { %1936 = vst.msk [vmem:[%s4151_s22 + $0x58] sm:$0xff] %vm1924_vm4, %v1918_v1  ;;  %1952 = vst.msk [vmem:[%s3687_s19 + $0x58] sm:$0xff] %vm1924_vm4, %v1918_v1  ;;  %v1895_v16 = vadd.f32 %v4136_v24, %v1872_v10  ;;  %v1903_v17 = vadd.f32 %v4136_v24, %v1880_v11  ;;  %v3148_v18 = vpop.f32.mrb[6].mxu0  ;;  %v3160_v19 = vpop.f32.mrb[6].mxu1 }
 0x447   : > { %1927 = vst.msk [vmem:[%s4151_s22 + $0x10] sm:$0xff] %vm1924_vm4, %v1909_v8  ;;  %1943 = vst.msk [vmem:[%s3687_s19 + $0x10] sm:$0xff] %vm1924_vm4, %v1909_v8  ;;  %v1912_v20 = vmax.f32 %v1896_v14, 0.0  ;;  %v1920_v23 = vmax.f32 %v1904_v15, 0.0  ;;  %v1875_v25 = vadd.f32 %v3148_v18, %v4026_v61  ;;  %v1883_v26 = vadd.f32 %v3160_v19, %v4028_v62  ;;  %v1819_v27 = vpop.f32.mrb[7].mxu0  ;;  %v1859_v28 = vpop.f32.mrb[7].mxu1 }
 0x448   : > { %1935 = vst.msk [vmem:[%s4151_s22 + $0x50] sm:$0xff] %vm1924_vm4, %v1917_v9  ;;  %1951 = vst.msk [vmem:[%s3687_s19 + $0x50] sm:$0xff] %vm1924_vm4, %v1917_v9  ;;  %v1911_v29 = vmax.f32 %v1895_v16, 0.0  ;;  %v1919_v32 = vmax.f32 %v1903_v17, 0.0  ;;  %v1874_v33 = vadd.f32 %v1819_v27, %v4021_v51  ;;  %v1882_v34 = vadd.f32 %v1859_v28, %v4023_v52 }
 0x449   : > { %1930 = vst.msk [vmem:[%s4151_s22 + $0x28] sm:$0xff] %vm1924_vm4, %v1912_v20  ;;  %1946 = vst.msk [vmem:[%s3687_s19 + $0x28] sm:$0xff] %vm1924_vm4, %v1912_v20  ;;  %v1898_v35 = vadd.f32 %v4136_v24, %v1875_v25  ;;  %v1906_v36 = vadd.f32 %v4136_v24, %v1883_v26 }
 0x44a   : > { %1938 = vst.msk [vmem:[%s4151_s22 + $0x68] sm:$0xff] %vm1924_vm4, %v1920_v23  ;;  %1954 = vst.msk [vmem:[%s3687_s19 + $0x68] sm:$0xff] %vm1924_vm4, %v1920_v23  ;;  %v1897_v37 = vadd.f32 %v4136_v24, %v1874_v33  ;;  %v1905_v38 = vadd.f32 %v4136_v24, %v1882_v34 }
 0x44b   : > { %1929 = vst.msk [vmem:[%s4151_s22 + $0x20] sm:$0xff] %vm1924_vm4, %v1911_v29  ;;  %1945 = vst.msk [vmem:[%s3687_s19 + $0x20] sm:$0xff] %vm1924_vm4, %v1911_v29  ;;  %v1914_v41 = vmax.f32 %v1898_v35, 0.0  ;;  %v1922_v42 = vmax.f32 %v1906_v36, 0.0 }
 0x44c   : > { %1937 = vst.msk [vmem:[%s4151_s22 + $0x60] sm:$0xff] %vm1924_vm4, %v1919_v32  ;;  %1953 = vst.msk [vmem:[%s3687_s19 + $0x60] sm:$0xff] %vm1924_vm4, %v1919_v32  ;;  %v1913_v43 = vmax.f32 %v1897_v37, 0.0  ;;  %v1921_v44 = vmax.f32 %v1905_v38, 0.0 }
 0x44d   : > { %1932 = vst.msk [vmem:[%s4151_s22 + $0x38] sm:$0xff] %vm1924_vm4, %v1914_v41  ;;  %1948 = vst.msk [vmem:[%s3687_s19 + $0x38] sm:$0xff] %vm1924_vm4, %v1914_v41 }
 0x44e   : > { %1940 = vst.msk [vmem:[%s4151_s22 + $0x78] sm:$0xff] %vm1924_vm4, %v1922_v42  ;;  %1956 = vst.msk [vmem:[%s3687_s19 + $0x78] sm:$0xff] %vm1924_vm4, %v1922_v42 }
 0x44f   : > { %1931 = vst.msk [vmem:[%s4151_s22 + $0x30] sm:$0xff] %vm1924_vm4, %v1913_v43  ;;  %1947 = vst.msk [vmem:[%s3687_s19 + $0x30] sm:$0xff] %vm1924_vm4, %v1913_v43 }
 0x450   : > { %1939 = vst.msk [vmem:[%s4151_s22 + $0x70] sm:$0xff] %vm1924_vm4, %v1921_v44  ;;  %1955 = vst.msk [vmem:[%s3687_s19 + $0x70] sm:$0xff] %vm1924_vm4, %v1921_v44 }
 0x451 PF: > { %p2779_p0 = scmp.ne.s32.totalorder %s3470_s28, 1 }
 0x452   : > { %v2010_v24 = vld [vmem:[#allocation7] sm:$0xff] (!%p2779_p0)  ;;  %v2011_v45 = vld [vmem:[#allocation7 + $0x8] sm:$0xff] (!%p2779_p0)  ;;  %v2012_v46 = vld [vmem:[#allocation7 + $0x10] sm:$0xff] (!%p2779_p0)  ;;  %vm2014_vm6 = vcmask (!%p2779_p0), 261120   ;;  %s4239_s23 = scalar_lea.vmem (!%p2779_p0), [#allocation3], %s3668_s30  ;;  %s4480_s27 = sld [smem:[#allocation16_spill]] (!%p2779_p0) }
 0x453   : > { %1992 = sbr.rel (%p2779_p0) target bundleno = 1579 (0x62b), region = 88  ;;  %v3273_v47 = vpack.c.bf16 (!%p2779_p0), %v2011_v45, %v2010_v24  ;;  %v2013_v53 = vld [vmem:[#allocation7 + $0x18] sm:$0xff] (!%p2779_p0)  ;;  %v2247_v10 = vld [vmem:[%s4458_s9] sm:$0xff] (!%p2779_p0)  ;;  %v2250_v16 = vld [vmem:[%s4458_s9 + $0x18] sm:$0xff] (!%p2779_p0)  ;;  %vm2483_vm7 = vcmask (!%p2779_p0), 7168  }
 0x454   : > { %v3277_v56 = vpack.c.bf16 (!%p2779_p0), %v2013_v53, %v2012_v46  ;;  %v2248_v11 = vld [vmem:[%s4458_s9 + $0x8] sm:$0xff] (!%p2779_p0)  ;;  %v2249_v15 = vld [vmem:[%s4458_s9 + $0x10] sm:$0xff] (!%p2779_p0) }
 0x455   : > { %3274 = vmatprep.subr.bf16.mxu0 (!%p2779_p0), %v3273_v47  ;;  %v3281_v14 = vpack.c.bf16 (!%p2779_p0), %v2248_v11, %v2247_v10  ;;  %v3285_v17 = vpack.c.bf16 (!%p2779_p0), %v2250_v16, %v2249_v15 }
 0x456   : > { %3276 = vmatpush3.bf16.msra.mxu0 (!%p2779_p0), %v3273_v47 }
 0x457   : > { %v1994_v54 = vld [vmem:[%s4239_s23] sm:$0xff] (!%p2779_p0)  ;;  %v1995_v55 = vld [vmem:[%s4239_s23 + $0x8] sm:$0xff] (!%p2779_p0)  ;;  %v1996_v48 = vld [vmem:[%s4239_s23 + $0x10] sm:$0xff] (!%p2779_p0)  ;;  %3278 = vmatprep.subr.bf16.mxu0 (!%p2779_p0), %v3277_v56  ;;  %3282 = vmatprep.subr.bf16.mxu1 (!%p2779_p0), %v3281_v14 }
 0x458   : > { %3169 = vmatprep.mubr.msk.f32.mxu0 (!%p2779_p0), %vm2014_vm6, %v1994_v54  ;;  %2451 = vst.msk [vmem:[%s3687_s19] sm:$0xff] (!%p2779_p0), %vm2014_vm6, %v1994_v54  ;;  %2452 = vst.msk [vmem:[%s3687_s19 + $0x8] sm:$0xff] (!%p2779_p0), %vm2014_vm6, %v1995_v55  ;;  %v1997_v57 = vld [vmem:[%s4239_s23 + $0x18] sm:$0xff] (!%p2779_p0)  ;;  %v1998_v60 = vld [vmem:[%s4239_s23 + $0x20] sm:$0xff] (!%p2779_p0)  ;;  %3284 = vmatpush3.bf16.msra.mxu1 (!%p2779_p0), %v3281_v14 }
 0x459   : > { %2453 = vst.msk [vmem:[%s3687_s19 + $0x10] sm:$0xff] (!%p2779_p0), %vm2014_vm6, %v1996_v48  ;;  %2454 = vst.msk [vmem:[%s3687_s19 + $0x18] sm:$0xff] (!%p2779_p0), %vm2014_vm6, %v1997_v57  ;;  %v1999_v63 = vld [vmem:[%s4239_s23 + $0x28] sm:$0xff] (!%p2779_p0)  ;;  %v2000_v49 = vld [vmem:[%s4239_s23 + $0x30] sm:$0xff] (!%p2779_p0)  ;;  %3286 = vmatprep.subr.bf16.mxu1 (!%p2779_p0), %v3285_v17 }
 0x45a   : > { %2455 = vst.msk [vmem:[%s3687_s19 + $0x20] sm:$0xff] %vm2014_vm6, %v1998_v60  ;;  %v2001_v50 = vld [vmem:[%s4239_s23 + $0x38] sm:$0xff]  ;;  %2456 = vst.msk [vmem:[%s3687_s19 + $0x28] sm:$0xff] %vm2014_vm6, %v1999_v63  ;;  %v2002_v0 = vld [vmem:[%s4239_s23 + $0x40] sm:$0xff]  ;;  %3280 = vmatpush3.bf16.msra.mxu0 %v3277_v56 }
 0x45b   : > { %2457 = vst.msk [vmem:[%s3687_s19 + $0x30] sm:$0xff] %vm2014_vm6, %v2000_v49  ;;  %2458 = vst.msk [vmem:[%s3687_s19 + $0x38] sm:$0xff] %vm2014_vm6, %v2001_v50  ;;  %v2003_v1 = vld [vmem:[%s4239_s23 + $0x48] sm:$0xff]  ;;  %v2004_v2 = vld [vmem:[%s4239_s23 + $0x50] sm:$0xff] }
 0x45c   : > { %2459 = vst.msk [vmem:[%s3687_s19 + $0x40] sm:$0xff] %vm2014_vm6, %v2002_v0  ;;  %2460 = vst.msk [vmem:[%s3687_s19 + $0x48] sm:$0xff] %vm2014_vm6, %v2003_v1  ;;  %v2005_v5 = vld [vmem:[%s4239_s23 + $0x58] sm:$0xff]  ;;  %v2006_v6 = vld [vmem:[%s4239_s23 + $0x60] sm:$0xff]  ;;  %3288 = vmatpush3.bf16.msra.mxu1 %v3285_v17 }
 0x45d   : > { %2461 = vst.msk [vmem:[%s3687_s19 + $0x50] sm:$0xff] %vm2014_vm6, %v2004_v2  ;;  %v2007_v7 = vld [vmem:[%s4239_s23 + $0x68] sm:$0xff]  ;;  %2462 = vst.msk [vmem:[%s3687_s19 + $0x58] sm:$0xff] %vm2014_vm6, %v2005_v5  ;;  %v2008_v8 = vld [vmem:[%s4239_s23 + $0x70] sm:$0xff]  ;;  %3170 = vmatmul.mubr.msk.f32.vlgmr.msra.gmra.mrb[0].mxu0 %vm2014_vm6, %v1995_v55 }
 0x45e   : > { %2463 = vst.msk [vmem:[%s3687_s19 + $0x60] sm:$0xff] %vm2014_vm6, %v2006_v6  ;;  %2464 = vst.msk [vmem:[%s3687_s19 + $0x68] sm:$0xff] %vm2014_vm6, %v2007_v7  ;;  %v2009_v9 = vld [vmem:[%s4239_s23 + $0x78] sm:$0xff]  ;;  %3172 = vmatprep.mubr.msk.f32.mxu0 %vm2014_vm6, %v1996_v48  ;;  %v4320_v19 = vld [vmem:[%s4480_s27] ss:$0 sm:$0xff] }
 0x45f   : > { %2465 = vst.msk [vmem:[%s3687_s19 + $0x70] sm:$0xff] %vm2014_vm6, %v2008_v8  ;;  %2466 = vst.msk [vmem:[%s3687_s19 + $0x78] sm:$0xff] %vm2014_vm6, %v2009_v9 }
 0x461   : > { %3173 = vmatmul.mubr.msk.f32.gmra.mrb[2].mxu0 %vm2014_vm6, %v1997_v57 }
 0x462   : > { %3175 = vmatprep.mubr.msk.f32.mxu0 %vm2014_vm6, %v1998_v60 }
 0x465   : > { %3176 = vmatmul.mubr.msk.f32.gmra.mrb[4].mxu0 %vm2014_vm6, %v1999_v63 }
 0x466   : > { %3178 = vmatprep.mubr.msk.f32.mxu0 %vm2014_vm6, %v2000_v49 }
 0x469   : > { %3179 = vmatmul.mubr.msk.f32.gmra.mrb[6].mxu0 %vm2014_vm6, %v2001_v50 }
 0x46a   : > { %3181 = vmatprep.mubr.msk.f32.mxu0 %vm2014_vm6, %v2002_v0 }
 0x46d   : > { %3182 = vmatmul.mubr.msk.f32.gmra.mrb[8].mxu0 %vm2014_vm6, %v2003_v1 }
 0x46e   : > { %3184 = vmatprep.mubr.msk.f32.mxu0 %vm2014_vm6, %v2004_v2 }
 0x471   : > { %3185 = vmatmul.mubr.msk.f32.gmra.mrb[10].mxu0 %vm2014_vm6, %v2005_v5 }
 0x472   : > { %3187 = vmatprep.mubr.msk.f32.mxu0 %vm2014_vm6, %v2006_v6 }
 0x475   : > { %3188 = vmatmul.mubr.msk.f32.gmra.mrb[12].mxu0 %vm2014_vm6, %v2007_v7 }
 0x476   : > { %3190 = vmatprep.mubr.msk.f32.mxu0 %vm2014_vm6, %v2008_v8 }
 0x479   : > { %3191 = vmatmul.mubr.msk.f32.gmra.mrb[14].mxu0 %vm2014_vm6, %v2009_v9 }
 0x530   : > { %v3171_v18 = vpop.f32.mrb[0].mxu0 }
 0x531   : > { %v2209_v20 = vadd.f32 %v3171_v18, %v4000_v3  ;;  %v2129_v23 = vpop.f32.mrb[1].mxu0 }
 0x532   : > { %v2208_v25 = vadd.f32 %v2129_v23, %v3996_v58 }
 0x533   : > { %v2232_v26 = vadd.f32 %v4320_v19, %v2209_v20 }
 0x534   : > { %v3174_v27 = vpop.f32.mrb[2].mxu0  ;;  %v2231_v28 = vadd.f32 %v4320_v19, %v2208_v25 }
 0x535   : > { %2468 = vst.msk [vmem:[%s3692_s29 + $0x8] sm:$0xff] %vm2014_vm6, %v2232_v26  ;;  %v2211_v29 = vadd.f32 %v3174_v27, %v4008_v21  ;;  %v2139_v32 = vpop.f32.mrb[3].mxu0 }
 0x536   : > { %v2210_v33 = vadd.f32 %v2139_v32, %v4004_v12  ;;  %3201 = vmatprep.mubr.msk.f32.mxu1 %vm2014_vm6, %v2231_v28  ;;  %2467 = vst.msk [vmem:[%s3692_s29] sm:$0xff] %vm2014_vm6, %v2231_v28 }
 0x537   : > { %v2234_v58 = vadd.f32 %v4320_v19, %v2211_v29  ;;  %3202 = vmatmul.mubr.msk.f32.vlgmr.msra.gmra.mrb[0].mxu1 %vm2014_vm6, %v2232_v26 }
 0x538   : > { %v2233_v3 = vadd.f32 %v4320_v19, %v2210_v33  ;;  %v3177_v34 = vpop.f32.mrb[4].mxu0 }
 0x539   : > { %2470 = vst.msk [vmem:[%s3692_s29 + $0x18] sm:$0xff] %vm2014_vm6, %v2234_v58  ;;  %v2213_v21 = vadd.f32 %v3177_v34, %v4016_v39  ;;  %v2149_v35 = vpop.f32.mrb[5].mxu0 }
 0x53a   : > { %2469 = vst.msk [vmem:[%s3692_s29 + $0x10] sm:$0xff] %vm2014_vm6, %v2233_v3  ;;  %v2212_v12 = vadd.f32 %v2149_v35, %v4012_v30  ;;  %3204 = vmatprep.mubr.msk.f32.mxu1 %vm2014_vm6, %v2233_v3 }
 0x53b   : > { %v2236_v36 = vadd.f32 %v4320_v19, %v2213_v21  ;;  %3205 = vmatmul.mubr.msk.f32.gmra.mrb[2].mxu1 %vm2014_vm6, %v2234_v58 }
 0x53c   : > { %v2235_v37 = vadd.f32 %v4320_v19, %v2212_v12  ;;  %v3180_v38 = vpop.f32.mrb[6].mxu0 }
 0x53d   : > { %2472 = vst.msk [vmem:[%s3692_s29 + $0x28] sm:$0xff] %vm2014_vm6, %v2236_v36  ;;  %v2215_v39 = vadd.f32 %v3180_v38, %v4026_v61  ;;  %v2159_v41 = vpop.f32.mrb[7].mxu0 }
 0x53e   : > { %2471 = vst.msk [vmem:[%s3692_s29 + $0x20] sm:$0xff] %vm2014_vm6, %v2235_v37  ;;  %v2214_v30 = vadd.f32 %v2159_v41, %v4021_v51  ;;  %3207 = vmatprep.mubr.msk.f32.mxu1 %vm2014_vm6, %v2235_v37 }
 0x53f   : > { %v2238_v42 = vadd.f32 %v4320_v19, %v2215_v39  ;;  %3208 = vmatmul.mubr.msk.f32.gmra.mrb[4].mxu1 %vm2014_vm6, %v2236_v36 }
 0x540   : > { %v2237_v43 = vadd.f32 %v4320_v19, %v2214_v30  ;;  %v3183_v44 = vpop.f32.mrb[8].mxu0 }
 0x541   : > { %2474 = vst.msk [vmem:[%s3692_s29 + $0x38] sm:$0xff] %vm2014_vm6, %v2238_v42  ;;  %v2217_v61 = vadd.f32 %v3183_v44, %v4002_v4  ;;  %v2169_v24 = vpop.f32.mrb[9].mxu0 }
 0x542   : > { %2473 = vst.msk [vmem:[%s3692_s29 + $0x30] sm:$0xff] %vm2014_vm6, %v2237_v43  ;;  %v2216_v51 = vadd.f32 %v2169_v24, %v3998_v59  ;;  %3210 = vmatprep.mubr.msk.f32.mxu1 %vm2014_vm6, %v2237_v43 }
 0x543   : > { %v2240_v45 = vadd.f32 %v4320_v19, %v2217_v61  ;;  %3211 = vmatmul.mubr.msk.f32.gmra.mrb[6].mxu1 %vm2014_vm6, %v2238_v42 }
 0x544   : > { %v2239_v46 = vadd.f32 %v4320_v19, %v2216_v51  ;;  %v3186_v47 = vpop.f32.mrb[10].mxu0 }
 0x545   : > { %2476 = vst.msk [vmem:[%s3692_s29 + $0x48] sm:$0xff] %vm2014_vm6, %v2240_v45  ;;  %v2219_v4 = vadd.f32 %v3186_v47, %v4010_v22  ;;  %v2179_v53 = vpop.f32.mrb[11].mxu0 }
 0x546   : > { %2475 = vst.msk [vmem:[%s3692_s29 + $0x40] sm:$0xff] %vm2014_vm6, %v2239_v46  ;;  %v2218_v59 = vadd.f32 %v2179_v53, %v4006_v13  ;;  %3213 = vmatprep.mubr.msk.f32.mxu1 %vm2014_vm6, %v2239_v46 }
 0x547   : > { %v2242_v54 = vadd.f32 %v4320_v19, %v2219_v4  ;;  %3214 = vmatmul.mubr.msk.f32.gmra.mrb[8].mxu1 %vm2014_vm6, %v2240_v45 }
 0x548   : > { %v2241_v55 = vadd.f32 %v4320_v19, %v2218_v59  ;;  %v3189_v56 = vpop.f32.mrb[12].mxu0 }
 0x549   : > { %2478 = vst.msk [vmem:[%s3692_s29 + $0x58] sm:$0xff] %vm2014_vm6, %v2242_v54  ;;  %v2221_v22 = vadd.f32 %v3189_v56, %v4018_v40  ;;  %v2189_v48 = vpop.f32.mrb[13].mxu0 }
 0x54a   : > { %2477 = vst.msk [vmem:[%s3692_s29 + $0x50] sm:$0xff] %vm2014_vm6, %v2241_v55  ;;  %v2220_v13 = vadd.f32 %v2189_v48, %v4014_v31  ;;  %3216 = vmatprep.mubr.msk.f32.mxu1 %vm2014_vm6, %v2241_v55 }
 0x54b   : > { %v2244_v57 = vadd.f32 %v4320_v19, %v2221_v22  ;;  %3217 = vmatmul.mubr.msk.f32.gmra.mrb[10].mxu1 %vm2014_vm6, %v2242_v54 }
 0x54c   : > { %v2243_v60 = vadd.f32 %v4320_v19, %v2220_v13  ;;  %v3192_v63 = vpop.f32.mrb[14].mxu0 }
 0x54d   : > { %2480 = vst.msk [vmem:[%s3692_s29 + $0x68] sm:$0xff] %vm2014_vm6, %v2244_v57  ;;  %v2223_v40 = vadd.f32 %v3192_v63, %v4028_v62  ;;  %v2199_v49 = vpop.f32.mrb[15].mxu0 }
 0x54e   : > { %2479 = vst.msk [vmem:[%s3692_s29 + $0x60] sm:$0xff] %vm2014_vm6, %v2243_v60  ;;  %v2222_v31 = vadd.f32 %v2199_v49, %v4023_v52  ;;  %3219 = vmatprep.mubr.msk.f32.mxu1 %vm2014_vm6, %v2243_v60  ;;  %v2797_v52 = vld [vmem:[#allocation4] ss:$0 sm:$0xff] }
 0x54f   : > { %v2246_v50 = vadd.f32 %v4320_v19, %v2223_v40  ;;  %3220 = vmatmul.mubr.msk.f32.gmra.mrb[12].mxu1 %vm2014_vm6, %v2244_v57 }
 0x550   : > { %v2245_v0 = vadd.f32 %v4320_v19, %v2222_v31 }
 0x551   : > { %2482 = vst.msk [vmem:[%s3692_s29 + $0x78] sm:$0xff] %vm2014_vm6, %v2246_v50 }
 0x552   : > { %2481 = vst.msk [vmem:[%s3692_s29 + $0x70] sm:$0xff] %vm2014_vm6, %v2245_v0  ;;  %3222 = vmatprep.mubr.msk.f32.mxu1 %vm2014_vm6, %v2245_v0 }
 0x553   : > { %3223 = vmatmul.mubr.msk.f32.gmra.mrb[14].mxu1 %vm2014_vm6, %v2246_v50 }
 0x60a   : > { %v3203_v62 = vpop.f32.mrb[0].mxu1 }
 0x60b   : > { %v2378_v1 = vadd.f32 %v3203_v62, %v2797_v52  ;;  %v2372_v2 = vpop.f32.mrb[1].mxu1 }
 0x60c   : > { %v2373_v5 = vadd.f32 %v2797_v52, %v2372_v2 }
 0x60d   : > { %2485 = vst.msk [vmem:[%s3697_s14 + $0x8] sm:$0xff] %vm2483_vm7, %v2378_v1 }
 0x60e   : > { %2484 = vst.msk [vmem:[%s3697_s14] sm:$0xff] %vm2483_vm7, %v2373_v5  ;;  %v3206_v6 = vpop.f32.mrb[2].mxu1 }
 0x60f   : > { %v2388_v7 = vadd.f32 %v3206_v6, %v2797_v52  ;;  %v2382_v8 = vpop.f32.mrb[3].mxu1 }
 0x610   : > { %v2383_v9 = vadd.f32 %v2797_v52, %v2382_v8 }
 0x611   : > { %2487 = vst.msk [vmem:[%s3697_s14 + $0x18] sm:$0xff] %vm2483_vm7, %v2388_v7 }
 0x612   : > { %2486 = vst.msk [vmem:[%s3697_s14 + $0x10] sm:$0xff] %vm2483_vm7, %v2383_v9  ;;  %v3209_v10 = vpop.f32.mrb[4].mxu1 }
 0x613   : > { %v2398_v11 = vadd.f32 %v3209_v10, %v2797_v52  ;;  %v2392_v14 = vpop.f32.mrb[5].mxu1 }
 0x614   : > { %v2393_v15 = vadd.f32 %v2797_v52, %v2392_v14 }
 0x615   : > { %2489 = vst.msk [vmem:[%s3697_s14 + $0x28] sm:$0xff] %vm2483_vm7, %v2398_v11 }
 0x616   : > { %2488 = vst.msk [vmem:[%s3697_s14 + $0x20] sm:$0xff] %vm2483_vm7, %v2393_v15  ;;  %v3212_v16 = vpop.f32.mrb[6].mxu1 }
 0x617   : > { %v2408_v17 = vadd.f32 %v3212_v16, %v2797_v52  ;;  %v2402_v18 = vpop.f32.mrb[7].mxu1 }
 0x618   : > { %v2403_v19 = vadd.f32 %v2797_v52, %v2402_v18 }
 0x619   : > { %2491 = vst.msk [vmem:[%s3697_s14 + $0x38] sm:$0xff] %vm2483_vm7, %v2408_v17 }
 0x61a   : > { %2490 = vst.msk [vmem:[%s3697_s14 + $0x30] sm:$0xff] %vm2483_vm7, %v2403_v19  ;;  %v3215_v20 = vpop.f32.mrb[8].mxu1 }
 0x61b   : > { %v2418_v23 = vadd.f32 %v3215_v20, %v2797_v52  ;;  %v2412_v25 = vpop.f32.mrb[9].mxu1 }
 0x61c   : > { %v2413_v26 = vadd.f32 %v2797_v52, %v2412_v25 }
 0x61d   : > { %2493 = vst.msk [vmem:[%s3697_s14 + $0x48] sm:$0xff] %vm2483_vm7, %v2418_v23 }
 0x61e   : > { %2492 = vst.msk [vmem:[%s3697_s14 + $0x40] sm:$0xff] %vm2483_vm7, %v2413_v26  ;;  %v3218_v27 = vpop.f32.mrb[10].mxu1 }
 0x61f   : > { %v2428_v28 = vadd.f32 %v3218_v27, %v2797_v52  ;;  %v2422_v29 = vpop.f32.mrb[11].mxu1 }
 0x620   : > { %v2423_v32 = vadd.f32 %v2797_v52, %v2422_v29 }
 0x621   : > { %2495 = vst.msk [vmem:[%s3697_s14 + $0x58] sm:$0xff] %vm2483_vm7, %v2428_v28 }
 0x622   : > { %2494 = vst.msk [vmem:[%s3697_s14 + $0x50] sm:$0xff] %vm2483_vm7, %v2423_v32  ;;  %v3221_v33 = vpop.f32.mrb[12].mxu1 }
 0x623   : > { %v2438_v58 = vadd.f32 %v3221_v33, %v2797_v52  ;;  %v2432_v3 = vpop.f32.mrb[13].mxu1 }
 0x624   : > { %v2433_v34 = vadd.f32 %v2797_v52, %v2432_v3 }
 0x625   : > { %2497 = vst.msk [vmem:[%s3697_s14 + $0x68] sm:$0xff] %vm2483_vm7, %v2438_v58 }
 0x626   : > { %2496 = vst.msk [vmem:[%s3697_s14 + $0x60] sm:$0xff] %vm2483_vm7, %v2433_v34  ;;  %v3224_v21 = vpop.f32.mrb[14].mxu1 }
 0x627   : > { %v2448_v35 = vadd.f32 %v3224_v21, %v2797_v52  ;;  %v2442_v12 = vpop.f32.mrb[15].mxu1 }
 0x628   : > { %v2443_v36 = vadd.f32 %v2797_v52, %v2442_v12 }
 0x629   : > { %2499 = vst.msk [vmem:[%s3697_s14 + $0x78] sm:$0xff] %vm2483_vm7, %v2448_v35 }
 0x62a   : > { %2498 = vst.msk [vmem:[%s3697_s14 + $0x70] sm:$0xff] %vm2483_vm7, %v2443_v36 }
 0x62b PF: > { %s4481_s29 = sld [smem:[#allocation13_spill]]  ;;  %s4482_s27 = sld [smem:[#allocation11_spill]] }
 0x62c   : > { %s4483_s28 = sld [smem:[#allocation12_spill]]  ;;  %s4485_s30 = sld [smem:[#allocation15_spill]] }
 0x631   : > { %s28_s14 = sadd.s32 1, %s4481_s29   ;;  %s4484_s29 = sld [smem:[#allocation14_spill]] }
 0x632   : > { %p25_p1 = scmp.ge.s32.totalorder %s28_s14, 6  }
 0x634   :  { %27 = sbr.rel (!%p25_p1) target bundleno = 7 (0x7), region = 149 }
 0x63b   :  { %2556 = vsyncpa [#allocation6], 1 }
 0x63c   :  { %2558 = vsyncpa [#allocation6 + $0x1], 1 }
 0x63d   :  { %2559 = vsyncpa [#allocation8], 1 }

</bundles_post_ra>
